<compile_context>
chip_gen: v7x
topology: tpu7x:2x2x1
jax: 0.10.0
libtpu: 0.0.40
codegen_flags: <defaults>
</compile_context>

<pallas_src>
import jax
import jax.numpy as jnp
from jax.experimental import pallas as pl
from jax.experimental.pallas import tpu as pltpu

N_HIDDEN = 32
N_OUTPUTS = 3
BATCH = 2
SEQ_LEN = 3          # required by the architecture (25 * (L - 2) == 25)
BN_EPS = 1e-5

OUT_PAD = 128        # lane-dense padded output width (sliced to N_OUTPUTS outside)
C_IN_PAD = 256       # input channels padded 200 -> 256 (2 full lane groups)

# (kernel_size, c_in, c_out, padding) for the four Conv1d layers
CONV_CFG = [
    (3, 200, 150, 1),
    (2, 150, 100, 1),
    (2, 100, 50, 1),
    (2, 50, 25, 0),
]


def _cpad(c):
    """Round a channel count up to a 128-lane multiple (aligned im2col tap blocks)."""
    return ((c + 127) // 128) * 128


# im2col scratch lane extent (max over layers): 3 taps * 256 padded channels
IM_COLS = 3 * _cpad(200)


def _make_kernel(blk):
    """Build the forward kernel for a batch tile of `blk` rows."""

    def kernel(x_ref,
               w1_ref, b1_ref, w2_ref, b2_ref,
               w3_ref, b3_ref, w4_ref, b4_ref,
               wf2_ref, bf2_ref, wf3_ref, bf3_ref,
               out_ref, im_ref):
        # Activations are carried as a Python list of per-position (blk, C) f32
        # tiles.  Each conv layer builds an aligned bf16 im2col matrix in
        # `im_ref` and runs one (l_out*blk, k*c_pad) @ (k*c_pad, c_out) MXU
        # matmul (bf16 x bf16 -> f32; BN already folded; bias+ReLU fused after).

        def conv_layer(blocks, w_ref_, b_ref_, k, pad, c_pad):
            l_in = len(blocks)
            c_in = blocks[0].shape[-1]
            l_out = l_in + 2 * pad - k + 1
            rows, cols = l_out * blk, k * c_pad
            for t in range(l_out):
                r0 = t * blk
                for kk in range(k):
                    src = t + kk - pad
                    c0 = kk * c_pad
                    if 0 <= src < l_in:
                        # real tap: store the activation block (bf16)
                        im_ref[r0:r0 + blk, c0:c0 + c_in] = (
                            blocks[src].astype(jnp.bfloat16))
                    else:
                        # conv zero-padding tap: zero the whole aligned tap block.
                        # Padded-channel lanes of *real* taps are never zeroed
                        # per-layer; they only ever hold finite leftovers (layer 1
                        # fully overwrites the scratch each step) and the matching
                        # weight rows are zero.
                        im_ref[r0:r0 + blk, c0:c0 + c_pad] = jnp.zeros(
                            (blk, c_pad), jnp.bfloat16)
            y = jnp.dot(im_ref[0:rows, 0:cols], w_ref_[...],
                        preferred_element_type=jnp.float32)
            y = jnp.maximum(y + b_ref_[...], 0.0)      # fused bias + ReLU (BN folded)
            return [y[t * blk:(t + 1) * blk, :] for t in range(l_out)]

        def maxpool(blocks):                           # MaxPool1d(2, stride=1)
            return [jnp.maximum(blocks[t], blocks[t + 1])
                    for t in range(len(blocks) - 1)]

        # Input: (SEQ_LEN, blk, 256) bf16, channel-padded with real zeros, so
        # layer 1's 9 tap stores are unmasked 256-wide and cover all of im_ref.
        blocks = [x_ref[t] for t in range(SEQ_LEN)]

        blocks = conv_layer(blocks, w1_ref, b1_ref, k=3, pad=1, c_pad=256)
        blocks = maxpool(blocks)                       # L: 3 -> 2
        blocks = conv_layer(blocks, w2_ref, b2_ref, k=2, pad=1, c_pad=256)
        blocks = maxpool(blocks)                       # L: 3 -> 2
        # nn.Dropout(dropout): identity in inference mode.
        blocks = conv_layer(blocks, w3_ref, b3_ref, k=2, pad=1, c_pad=128)
        blocks = maxpool(blocks)                       # L: 3 -> 2
        blocks = conv_layer(blocks, w4_ref, b4_ref, k=2, pad=0, c_pad=128)

        feat = blocks[0]                               # (blk, 25) f32 == Flatten()

        z = jnp.dot(feat.astype(jnp.bfloat16), wf2_ref[...],
                    preferred_element_type=jnp.float32) + bf2_ref[...]
        z = jnp.maximum(z, 0.0)
        out = jnp.dot(z.astype(jnp.bfloat16), wf3_ref[...],
                      preferred_element_type=jnp.float32) + bf3_ref[...]
        out_ref[...] = out.astype(out_ref.dtype)       # (blk, 128) lane-dense store

    return kernel


def _pick_blk(n):
    """Batch-tile rows: grow with the batch for MXU row utilization (cap 128),
    but keep >= 2 grid steps once n exceeds one tile so ("parallel",) can shard
    across both v7x TensorCores."""
    n8 = pl.cdiv(n, 8) * 8
    if n8 <= 8:
        return 8
    return max(8, min(128, pl.cdiv(n8, 16) * 8))       # ~half the batch, 8-aligned


def cnn_regression_quantile_forward(x_nlc, params, *, blk=None):
    """x_nlc: (N, L=3, 200) float32 (NLC layout). Returns (N, n_outputs)."""
    n = x_nlc.shape[0]
    if blk is None:
        blk = _pick_blk(n)
    n_pad = pl.cdiv(n, blk) * blk

    # (L, N_pad, 256) bf16: channel-padded with zeros, batch-padded with zeros.
    x_pad = jnp.zeros((SEQ_LEN, n_pad, C_IN_PAD), jnp.bfloat16)
    x_pad = x_pad.at[:, :n, :200].set(
        jnp.transpose(x_nlc, (1, 0, 2)).astype(jnp.bfloat16))

    weight_args, weight_specs = [], []
    for i in range(1, 5):
        for name in (f"w{i}", f"b{i}"):
            arr = params[name]
            weight_args.append(arr)
            weight_specs.append(pl.BlockSpec(arr.shape, lambda b: (0, 0)))
    for name in ("wf2", "bf2", "wf3", "bf3"):
        arr = params[name]
        weight_args.append(arr)
        weight_specs.append(pl.BlockSpec(arr.shape, lambda b: (0, 0)))

    out = pl.pallas_call(
        _make_kernel(blk),
        out_shape=jax.ShapeDtypeStruct((n_pad, OUT_PAD), jnp.float32),
        grid=(n_pad // blk,),
        in_specs=[pl.BlockSpec((SEQ_LEN, blk, C_IN_PAD), lambda b: (0, b, 0))]
                 + weight_specs,
        out_specs=pl.BlockSpec((blk, OUT_PAD), lambda b: (b, 0)),
        scratch_shapes=[pltpu.VMEM((3 * blk, IM_COLS), jnp.bfloat16)],
        compiler_params=pltpu.CompilerParams(
            dimension_semantics=("parallel",)),
    )(x_pad, *weight_args)
    return out[:n, :N_OUTPUTS]


def init_params(key):
    """Deterministic synthetic parameters.

    Eval-mode BatchNorm is folded into the conv weights/biases:
        scale = gamma / sqrt(running_var + eps)
        w_fold = w * scale (per out-channel),  b_fold = b * scale + (beta - mean*scale)
    Kernel weights are stored bf16 in the aligned im2col layout (k * c_pad, c_out)
    with zero rows for the channel padding.  `ref_*` entries hold the same
    (bf16-quantized) weights upcast to f32 for the pure-JAX reference.
    """
    params = {}
    for i, (k, cin, cout, _) in enumerate(CONV_CFG, start=1):
        key, kw, kb, kg, kbeta, krm, krv = jax.random.split(key, 7)
        w = 0.1 * jax.random.normal(kw, (k, cin, cout), jnp.float32)
        b = 0.1 * jax.random.normal(kb, (1, cout), jnp.float32)
        gamma = 1.0 + 0.1 * jax.random.normal(kg, (1, cout), jnp.float32)
        beta = 0.1 * jax.random.normal(kbeta, (1, cout), jnp.float32)
        rmean = 0.1 * jax.random.normal(krm, (1, cout), jnp.float32)
        rvar = 1.0 + 0.1 * jnp.abs(jax.random.normal(krv, (1, cout), jnp.float32))
        scale = gamma * jax.lax.rsqrt(rvar + BN_EPS)          # (1, cout)
        shift = beta - rmean * scale
        w_fold = (w * scale[None]).astype(jnp.bfloat16)       # fold BN into conv
        b_fold = b * scale + shift                            # f32 bias
        cpad = _cpad(cin)
        w_pack = jnp.zeros((k * cpad, cout), jnp.bfloat16)
        for kk in range(k):
            w_pack = w_pack.at[kk * cpad: kk * cpad + cin].set(w_fold[kk])
        params[f"w{i}"] = w_pack
        params[f"b{i}"] = b_fold
        params[f"ref_w{i}"] = w_fold.astype(jnp.float32)

    key, k1, k2, k3, k4 = jax.random.split(key, 5)
    wf2 = (0.1 * jax.random.normal(k1, (25, N_HIDDEN), jnp.float32)).astype(jnp.bfloat16)
    bf2 = 0.1 * jax.random.normal(k2, (1, N_HIDDEN), jnp.float32)
    wf3 = (0.1 * jax.random.normal(k3, (N_HIDDEN, N_OUTPUTS), jnp.float32)).astype(jnp.bfloat16)
    bf3 = 0.1 * jax.random.normal(k4, (1, N_OUTPUTS), jnp.float32)
    params["wf2"] = wf2
    params["bf2"] = bf2
    # Lane-dense final layer: pad the last FC to OUT_PAD output lanes (zeros).
    params["wf3"] = jnp.zeros((N_HIDDEN, OUT_PAD), jnp.bfloat16).at[:, :N_OUTPUTS].set(wf3)
    params["bf3"] = jnp.zeros((1, OUT_PAD), jnp.float32).at[:, :N_OUTPUTS].set(bf3)
    params["ref_wf2"] = wf2.astype(jnp.float32)
    params["ref_bf2"] = bf2
    params["ref_wf3"] = wf3.astype(jnp.float32)
    params["ref_bf3"] = bf3
    return params


def _q(x):
    """Quantize to bf16 and back — mirrors the kernel feeding bf16 MXU operands."""
    return x.astype(jnp.bfloat16).astype(jnp.float32)


def reference_forward(x_ncl, params):
    """Pure-JAX reference (PyTorch NCL layout, lax conv) using the same BN-folded
    bf16 weights and the same bf16 activation-quantization points as the kernel."""
    hi = jax.lax.Precision.HIGHEST

    def conv(x, w_kio, b, pad):
        w_oik = jnp.transpose(w_kio, (2, 1, 0))               # (Cout, Cin, K)
        y = jax.lax.conv_general_dilated(
            _q(x), w_oik, window_strides=(1,), padding=[(pad, pad)],
            dimension_numbers=("NCH", "OIH", "NCH"), precision=hi)
        return y + b.reshape(1, -1, 1)

    def maxpool(x):                                           # MaxPool1d(2, stride=1)
        return jnp.maximum(x[:, :, :-1], x[:, :, 1:])

    h = x_ncl
    for i, (_, _, _, pad) in enumerate(CONV_CFG, start=1):
        h = jnp.maximum(conv(h, params[f"ref_w{i}"], params[f"b{i}"], pad), 0.0)
        if i < 4:
            h = maxpool(h)
    feat = h.reshape(h.shape[0], -1)                          # (N, 25)
    z = jnp.maximum(jnp.dot(_q(feat), params["ref_wf2"], precision=hi)
                    + params["ref_bf2"], 0.0)
    return jnp.dot(_q(z), params["ref_wf3"], precision=hi) + params["ref_bf3"]


if __name__ == "__main__":
    key = jax.random.PRNGKey(0)
    key, kx = jax.random.split(key)
    # PyTorch-layout input (N, C=200, L=3)
    x_ncl = jax.random.normal(kx, (BATCH, 200, SEQ_LEN), jnp.float32)
    x_nlc = jnp.transpose(x_ncl, (0, 2, 1))                   # kernel layout NLC
    params = init_params(jax.random.PRNGKey(42))

    out = cnn_regression_quantile_forward(x_nlc, params)
    out = jax.block_until_ready(out)

    ref = reference_forward(x_ncl, params)
    assert out.shape == (BATCH, N_OUTPUTS)
    # bf16 activations/weights in the kernel; reference mirrors the quantization
    # points, remaining delta is f32 accumulation order + rare bf16 rounding flips.
    assert jnp.allclose(out, ref, atol=1e-2, rtol=1e-2), (out, ref)
    print("KERNEL_OK")
</pallas_src>

<mosaic_0001>
module attributes {stable_mosaic.version = 11 : i64} {
  func.func @kernel(%arg0: i32, %arg1: memref<3x8x256xbf16, #tpu.memory_space<vmem>>, %arg2: memref<768x150xbf16, #tpu.memory_space<vmem>>, %arg3: memref<1x150xf32, #tpu.memory_space<vmem>>, %arg4: memref<512x100xbf16, #tpu.memory_space<vmem>>, %arg5: memref<1x100xf32, #tpu.memory_space<vmem>>, %arg6: memref<256x50xbf16, #tpu.memory_space<vmem>>, %arg7: memref<1x50xf32, #tpu.memory_space<vmem>>, %arg8: memref<256x25xbf16, #tpu.memory_space<vmem>>, %arg9: memref<1x25xf32, #tpu.memory_space<vmem>>, %arg10: memref<25x32xbf16, #tpu.memory_space<vmem>>, %arg11: memref<1x32xf32, #tpu.memory_space<vmem>>, %arg12: memref<32x128xbf16, #tpu.memory_space<vmem>>, %arg13: memref<1x128xf32, #tpu.memory_space<vmem>>, %arg14: memref<8x128xf32, #tpu.memory_space<vmem>>, %arg15: memref<24x768xbf16, #tpu.memory_space<vmem>>) attributes {dimension_semantics = [#tpu.dimension_semantics<parallel>], iteration_bounds = array<i64: 1>, scalar_prefetch = 0 : i64, scratch_operands = 1 : i64, tpu.core_type = #tpu.core_type<tc>, window_params = [{transform_indices = @transform_0, window_bounds = array<i64: 3, 8, 256>}, {pipeline_mode = #tpu.pipeline_mode<synchronous>, transform_indices = @transform_1, window_bounds = array<i64: 768, 150>}, {pipeline_mode = #tpu.pipeline_mode<synchronous>, transform_indices = @transform_2, window_bounds = array<i64: 1, 150>}, {pipeline_mode = #tpu.pipeline_mode<synchronous>, transform_indices = @transform_3, window_bounds = array<i64: 512, 100>}, {pipeline_mode = #tpu.pipeline_mode<synchronous>, transform_indices = @transform_4, window_bounds = array<i64: 1, 100>}, {pipeline_mode = #tpu.pipeline_mode<synchronous>, transform_indices = @transform_5, window_bounds = array<i64: 256, 50>}, {pipeline_mode = #tpu.pipeline_mode<synchronous>, transform_indices = @transform_6, window_bounds = array<i64: 1, 50>}, {pipeline_mode = #tpu.pipeline_mode<synchronous>, transform_indices = @transform_7, window_bounds = array<i64: 256, 25>}, {pipeline_mode = #tpu.pipeline_mode<synchronous>, transform_indices = @transform_8, window_bounds = array<i64: 1, 25>}, {pipeline_mode = #tpu.pipeline_mode<synchronous>, transform_indices = @transform_9, window_bounds = array<i64: 25, 32>}, {pipeline_mode = #tpu.pipeline_mode<synchronous>, transform_indices = @transform_10, window_bounds = array<i64: 1, 32>}, {pipeline_mode = #tpu.pipeline_mode<synchronous>, transform_indices = @transform_11, window_bounds = array<i64: 32, 128>}, {pipeline_mode = #tpu.pipeline_mode<synchronous>, transform_indices = @transform_12, window_bounds = array<i64: 1, 128>}, {transform_indices = @transform_13, window_bounds = array<i64: 8, 128>}]} {
    %c0 = arith.constant 0 : index
    %c0_0 = arith.constant 0 : index
    %c0_1 = arith.constant 0 : index
    %0 = vector.load %arg1[%c0, %c0_0, %c0_1] : memref<3x8x256xbf16, #tpu.memory_space<vmem>>, vector<1x8x256xbf16>
    %1 = vector.shape_cast %0 : vector<1x8x256xbf16> to vector<8x256xbf16>
    %c1 = arith.constant 1 : index
    %c0_2 = arith.constant 0 : index
    %c0_3 = arith.constant 0 : index
    %2 = vector.load %arg1[%c1, %c0_2, %c0_3] : memref<3x8x256xbf16, #tpu.memory_space<vmem>>, vector<1x8x256xbf16>
    %3 = vector.shape_cast %2 : vector<1x8x256xbf16> to vector<8x256xbf16>
    %c2 = arith.constant 2 : index
    %c0_4 = arith.constant 0 : index
    %c0_5 = arith.constant 0 : index
    %4 = vector.load %arg1[%c2, %c0_4, %c0_5] : memref<3x8x256xbf16, #tpu.memory_space<vmem>>, vector<1x8x256xbf16>
    %5 = vector.shape_cast %4 : vector<1x8x256xbf16> to vector<8x256xbf16>
    %cst = arith.constant 0.000000e+00 : bf16
    %6 = vector.broadcast %cst : bf16 to vector<8x256xbf16>
    %c0_6 = arith.constant 0 : index
    %c0_7 = arith.constant 0 : index
    %7 = vector.load %arg15[%c0_6, %c0_7] : memref<24x768xbf16, #tpu.memory_space<vmem>>, vector<8x256xbf16>
    tpu.vector_store %arg15[%c0_6, %c0_7], %6 {strides = array<i32>} : memref<24x768xbf16, #tpu.memory_space<vmem>>, vector<8x256xbf16>,
    %c0_8 = arith.constant 0 : index
    %c256 = arith.constant 256 : index
    %8 = vector.load %arg15[%c0_8, %c256] : memref<24x768xbf16, #tpu.memory_space<vmem>>, vector<8x256xbf16>
    tpu.vector_store %arg15[%c0_8, %c256], %1 {strides = array<i32>} : memref<24x768xbf16, #tpu.memory_space<vmem>>, vector<8x256xbf16>,
    %c0_9 = arith.constant 0 : index
    %c512 = arith.constant 512 : index
    %9 = vector.load %arg15[%c0_9, %c512] : memref<24x768xbf16, #tpu.memory_space<vmem>>, vector<8x256xbf16>
    tpu.vector_store %arg15[%c0_9, %c512], %3 {strides = array<i32>} : memref<24x768xbf16, #tpu.memory_space<vmem>>, vector<8x256xbf16>,
    %c8 = arith.constant 8 : index
    %c0_10 = arith.constant 0 : index
    %10 = vector.load %arg15[%c8, %c0_10] : memref<24x768xbf16, #tpu.memory_space<vmem>>, vector<8x256xbf16>
    tpu.vector_store %arg15[%c8, %c0_10], %1 {strides = array<i32>} : memref<24x768xbf16, #tpu.memory_space<vmem>>, vector<8x256xbf16>,
    %c8_11 = arith.constant 8 : index
    %c256_12 = arith.constant 256 : index
    %11 = vector.load %arg15[%c8_11, %c256_12] : memref<24x768xbf16, #tpu.memory_space<vmem>>, vector<8x256xbf16>
    tpu.vector_store %arg15[%c8_11, %c256_12], %3 {strides = array<i32>} : memref<24x768xbf16, #tpu.memory_space<vmem>>, vector<8x256xbf16>,
    %c8_13 = arith.constant 8 : index
    %c512_14 = arith.constant 512 : index
    %12 = vector.load %arg15[%c8_13, %c512_14] : memref<24x768xbf16, #tpu.memory_space<vmem>>, vector<8x256xbf16>
    tpu.vector_store %arg15[%c8_13, %c512_14], %5 {strides = array<i32>} : memref<24x768xbf16, #tpu.memory_space<vmem>>, vector<8x256xbf16>,
    %c16 = arith.constant 16 : index
    %c0_15 = arith.constant 0 : index
    %13 = vector.load %arg15[%c16, %c0_15] : memref<24x768xbf16, #tpu.memory_space<vmem>>, vector<8x256xbf16>
    tpu.vector_store %arg15[%c16, %c0_15], %3 {strides = array<i32>} : memref<24x768xbf16, #tpu.memory_space<vmem>>, vector<8x256xbf16>,
    %c16_16 = arith.constant 16 : index
    %c256_17 = arith.constant 256 : index
    %14 = vector.load %arg15[%c16_16, %c256_17] : memref<24x768xbf16, #tpu.memory_space<vmem>>, vector<8x256xbf16>
    tpu.vector_store %arg15[%c16_16, %c256_17], %5 {strides = array<i32>} : memref<24x768xbf16, #tpu.memory_space<vmem>>, vector<8x256xbf16>,
    %cst_18 = arith.constant 0.000000e+00 : bf16
    %15 = vector.broadcast %cst_18 : bf16 to vector<8x256xbf16>
    %c16_19 = arith.constant 16 : index
    %c512_20 = arith.constant 512 : index
    %16 = vector.load %arg15[%c16_19, %c512_20] : memref<24x768xbf16, #tpu.memory_space<vmem>>, vector<8x256xbf16>
    tpu.vector_store %arg15[%c16_19, %c512_20], %15 {strides = array<i32>} : memref<24x768xbf16, #tpu.memory_space<vmem>>, vector<8x256xbf16>,
    %c0_21 = arith.constant 0 : index
    %c0_22 = arith.constant 0 : index
    %17 = vector.load %arg15[%c0_21, %c0_22] : memref<24x768xbf16, #tpu.memory_space<vmem>>, vector<24x768xbf16>
    %c0_23 = arith.constant 0 : index
    %c0_24 = arith.constant 0 : index
    %18 = vector.load %arg2[%c0_23, %c0_24] : memref<768x150xbf16, #tpu.memory_space<vmem>>, vector<768x150xbf16>
    %cst_25 = arith.constant dense<0.000000e+00> : vector<24x150xf32>
    %19 = tpu.matmul %17, %18, %cst_25 {dimension_numbers = #tpu.dot_dimension_numbers<[1], [0], [0], [1], [0, 0, 1, 1], [], []>} : vector<24x768xbf16>, vector<768x150xbf16>, vector<24x150xf32> -> vector<24x150xf32>
    %c0_26 = arith.constant 0 : index
    %c0_27 = arith.constant 0 : index
    %20 = vector.load %arg3[%c0_26, %c0_27] : memref<1x150xf32, #tpu.memory_space<vmem>>, vector<1x150xf32>
    %21 = vector.broadcast %20 : vector<1x150xf32> to vector<24x150xf32>
    %22 = arith.addf %19, %21 : vector<24x150xf32>
    %cst_28 = arith.constant 0.000000e+00 : f32
    %23 = vector.broadcast %cst_28 : f32 to vector<24x150xf32>
    %24 = arith.maximumf %22, %23 : vector<24x150xf32>
    %25 = vector.extract_strided_slice %24 {offsets = [0, 0], sizes = [8, 150], strides = [1, 1]} : vector<24x150xf32> to vector<8x150xf32>
    %26 = vector.extract_strided_slice %24 {offsets = [8, 0], sizes = [8, 150], strides = [1, 1]} : vector<24x150xf32> to vector<8x150xf32>
    %27 = vector.extract_strided_slice %24 {offsets = [16, 0], sizes = [8, 150], strides = [1, 1]} : vector<24x150xf32> to vector<8x150xf32>
    %28 = arith.maximumf %25, %26 : vector<8x150xf32>
    %29 = arith.maximumf %26, %27 : vector<8x150xf32>
    %cst_29 = arith.constant 0.000000e+00 : bf16
    %30 = vector.broadcast %cst_29 : bf16 to vector<8x256xbf16>
    %c0_30 = arith.constant 0 : index
    %c0_31 = arith.constant 0 : index
    %31 = vector.load %arg15[%c0_30, %c0_31] : memref<24x768xbf16, #tpu.memory_space<vmem>>, vector<8x256xbf16>
    tpu.vector_store %arg15[%c0_30, %c0_31], %30 {strides = array<i32>} : memref<24x768xbf16, #tpu.memory_space<vmem>>, vector<8x256xbf16>,
    %32 = arith.truncf %28 : vector<8x150xf32> to vector<8x150xbf16>
    %c0_32 = arith.constant 0 : index
    %c256_33 = arith.constant 256 : index
    %33 = vector.load %arg15[%c0_32, %c256_33] : memref<24x768xbf16, #tpu.memory_space<vmem>>, vector<8x150xbf16>
    tpu.vector_store %arg15[%c0_32, %c256_33], %32 {strides = array<i32>} : memref<24x768xbf16, #tpu.memory_space<vmem>>, vector<8x150xbf16>,
    %34 = arith.truncf %28 : vector<8x150xf32> to vector<8x150xbf16>
    %c8_34 = arith.constant 8 : index
    %c0_35 = arith.constant 0 : index
    %35 = vector.load %arg15[%c8_34, %c0_35] : memref<24x768xbf16, #tpu.memory_space<vmem>>, vector<8x150xbf16>
    tpu.vector_store %arg15[%c8_34, %c0_35], %34 {strides = array<i32>} : memref<24x768xbf16, #tpu.memory_space<vmem>>, vector<8x150xbf16>,
    %36 = arith.truncf %29 : vector<8x150xf32> to vector<8x150xbf16>
    %c8_36 = arith.constant 8 : index
    %c256_37 = arith.constant 256 : index
    %37 = vector.load %arg15[%c8_36, %c256_37] : memref<24x768xbf16, #tpu.memory_space<vmem>>, vector<8x150xbf16>
    tpu.vector_store %arg15[%c8_36, %c256_37], %36 {strides = array<i32>} : memref<24x768xbf16, #tpu.memory_space<vmem>>, vector<8x150xbf16>,
    %38 = arith.truncf %29 : vector<8x150xf32> to vector<8x150xbf16>
    %c16_38 = arith.constant 16 : index
    %c0_39 = arith.constant 0 : index
    %39 = vector.load %arg15[%c16_38, %c0_39] : memref<24x768xbf16, #tpu.memory_space<vmem>>, vector<8x150xbf16>
    tpu.vector_store %arg15[%c16_38, %c0_39], %38 {strides = array<i32>} : memref<24x768xbf16, #tpu.memory_space<vmem>>, vector<8x150xbf16>,
    %cst_40 = arith.constant 0.000000e+00 : bf16
    %40 = vector.broadcast %cst_40 : bf16 to vector<8x256xbf16>
    %c16_41 = arith.constant 16 : index
    %c256_42 = arith.constant 256 : index
    %41 = vector.load %arg15[%c16_41, %c256_42] : memref<24x768xbf16, #tpu.memory_space<vmem>>, vector<8x256xbf16>
    tpu.vector_store %arg15[%c16_41, %c256_42], %40 {strides = array<i32>} : memref<24x768xbf16, #tpu.memory_space<vmem>>, vector<8x256xbf16>,
    %c0_43 = arith.constant 0 : index
    %c0_44 = arith.constant 0 : index
    %42 = vector.load %arg15[%c0_43, %c0_44] : memref<24x768xbf16, #tpu.memory_space<vmem>>, vector<24x512xbf16>
    %c0_45 = arith.constant 0 : index
    %c0_46 = arith.constant 0 : index
    %43 = vector.load %arg4[%c0_45, %c0_46] : memref<512x100xbf16, #tpu.memory_space<vmem>>, vector<512x100xbf16>
    %cst_47 = arith.constant dense<0.000000e+00> : vector<24x100xf32>
    %44 = tpu.matmul %42, %43, %cst_47 {dimension_numbers = #tpu.dot_dimension_numbers<[1], [0], [0], [1], [0, 0, 1, 1], [], []>} : vector<24x512xbf16>, vector<512x100xbf16>, vector<24x100xf32> -> vector<24x100xf32>
    %c0_48 = arith.constant 0 : index
    %c0_49 = arith.constant 0 : index
    %45 = vector.load %arg5[%c0_48, %c0_49] : memref<1x100xf32, #tpu.memory_space<vmem>>, vector<1x100xf32>
    %46 = vector.broadcast %45 : vector<1x100xf32> to vector<24x100xf32>
    %47 = arith.addf %44, %46 : vector<24x100xf32>
    %cst_50 = arith.constant 0.000000e+00 : f32
    %48 = vector.broadcast %cst_50 : f32 to vector<24x100xf32>
    %49 = arith.maximumf %47, %48 : vector<24x100xf32>
    %50 = vector.extract_strided_slice %49 {offsets = [0, 0], sizes = [8, 100], strides = [1, 1]} : vector<24x100xf32> to vector<8x100xf32>
    %51 = vector.extract_strided_slice %49 {offsets = [8, 0], sizes = [8, 100], strides = [1, 1]} : vector<24x100xf32> to vector<8x100xf32>
    %52 = vector.extract_strided_slice %49 {offsets = [16, 0], sizes = [8, 100], strides = [1, 1]} : vector<24x100xf32> to vector<8x100xf32>
    %53 = arith.maximumf %50, %51 : vector<8x100xf32>
    %54 = arith.maximumf %51, %52 : vector<8x100xf32>
    %cst_51 = arith.constant 0.000000e+00 : bf16
    %55 = vector.broadcast %cst_51 : bf16 to vector<8x128xbf16>
    %c0_52 = arith.constant 0 : index
    %c0_53 = arith.constant 0 : index
    %56 = vector.load %arg15[%c0_52, %c0_53] : memref<24x768xbf16, #tpu.memory_space<vmem>>, vector<8x128xbf16>
    tpu.vector_store %arg15[%c0_52, %c0_53], %55 {strides = array<i32>} : memref<24x768xbf16, #tpu.memory_space<vmem>>, vector<8x128xbf16>,
    %57 = arith.truncf %53 : vector<8x100xf32> to vector<8x100xbf16>
    %c0_54 = arith.constant 0 : index
    %c128 = arith.constant 128 : index
    %58 = vector.load %arg15[%c0_54, %c128] : memref<24x768xbf16, #tpu.memory_space<vmem>>, vector<8x100xbf16>
    tpu.vector_store %arg15[%c0_54, %c128], %57 {strides = array<i32>} : memref<24x768xbf16, #tpu.memory_space<vmem>>, vector<8x100xbf16>,
    %59 = arith.truncf %53 : vector<8x100xf32> to vector<8x100xbf16>
    %c8_55 = arith.constant 8 : index
    %c0_56 = arith.constant 0 : index
    %60 = vector.load %arg15[%c8_55, %c0_56] : memref<24x768xbf16, #tpu.memory_space<vmem>>, vector<8x100xbf16>
    tpu.vector_store %arg15[%c8_55, %c0_56], %59 {strides = array<i32>} : memref<24x768xbf16, #tpu.memory_space<vmem>>, vector<8x100xbf16>,
    %61 = arith.truncf %54 : vector<8x100xf32> to vector<8x100xbf16>
    %c8_57 = arith.constant 8 : index
    %c128_58 = arith.constant 128 : index
    %62 = vector.load %arg15[%c8_57, %c128_58] : memref<24x768xbf16, #tpu.memory_space<vmem>>, vector<8x100xbf16>
    tpu.vector_store %arg15[%c8_57, %c128_58], %61 {strides = array<i32>} : memref<24x768xbf16, #tpu.memory_space<vmem>>, vector<8x100xbf16>,
    %63 = arith.truncf %54 : vector<8x100xf32> to vector<8x100xbf16>
    %c16_59 = arith.constant 16 : index
    %c0_60 = arith.constant 0 : index
    %64 = vector.load %arg15[%c16_59, %c0_60] : memref<24x768xbf16, #tpu.memory_space<vmem>>, vector<8x100xbf16>
    tpu.vector_store %arg15[%c16_59, %c0_60], %63 {strides = array<i32>} : memref<24x768xbf16, #tpu.memory_space<vmem>>, vector<8x100xbf16>,
    %cst_61 = arith.constant 0.000000e+00 : bf16
    %65 = vector.broadcast %cst_61 : bf16 to vector<8x128xbf16>
    %c16_62 = arith.constant 16 : index
    %c128_63 = arith.constant 128 : index
    %66 = vector.load %arg15[%c16_62, %c128_63] : memref<24x768xbf16, #tpu.memory_space<vmem>>, vector<8x128xbf16>
    tpu.vector_store %arg15[%c16_62, %c128_63], %65 {strides = array<i32>} : memref<24x768xbf16, #tpu.memory_space<vmem>>, vector<8x128xbf16>,
    %c0_64 = arith.constant 0 : index
    %c0_65 = arith.constant 0 : index
    %67 = vector.load %arg15[%c0_64, %c0_65] : memref<24x768xbf16, #tpu.memory_space<vmem>>, vector<24x256xbf16>
    %c0_66 = arith.constant 0 : index
    %c0_67 = arith.constant 0 : index
    %68 = vector.load %arg6[%c0_66, %c0_67] : memref<256x50xbf16, #tpu.memory_space<vmem>>, vector<256x50xbf16>
    %cst_68 = arith.constant dense<0.000000e+00> : vector<24x50xf32>
    %69 = tpu.matmul %67, %68, %cst_68 {dimension_numbers = #tpu.dot_dimension_numbers<[1], [0], [0], [1], [0, 0, 1, 1], [], []>} : vector<24x256xbf16>, vector<256x50xbf16>, vector<24x50xf32> -> vector<24x50xf32>
    %c0_69 = arith.constant 0 : index
    %c0_70 = arith.constant 0 : index
    %70 = vector.load %arg7[%c0_69, %c0_70] : memref<1x50xf32, #tpu.memory_space<vmem>>, vector<1x50xf32>
    %71 = vector.broadcast %70 : vector<1x50xf32> to vector<24x50xf32>
    %72 = arith.addf %69, %71 : vector<24x50xf32>
    %cst_71 = arith.constant 0.000000e+00 : f32
    %73 = vector.broadcast %cst_71 : f32 to vector<24x50xf32>
    %74 = arith.maximumf %72, %73 : vector<24x50xf32>
    %75 = vector.extract_strided_slice %74 {offsets = [0, 0], sizes = [8, 50], strides = [1, 1]} : vector<24x50xf32> to vector<8x50xf32>
    %76 = vector.extract_strided_slice %74 {offsets = [8, 0], sizes = [8, 50], strides = [1, 1]} : vector<24x50xf32> to vector<8x50xf32>
    %77 = vector.extract_strided_slice %74 {offsets = [16, 0], sizes = [8, 50], strides = [1, 1]} : vector<24x50xf32> to vector<8x50xf32>
    %78 = arith.maximumf %75, %76 : vector<8x50xf32>
    %79 = arith.maximumf %76, %77 : vector<8x50xf32>
    %80 = arith.truncf %78 : vector<8x50xf32> to vector<8x50xbf16>
    %c0_72 = arith.constant 0 : index
    %c0_73 = arith.constant 0 : index
    %81 = vector.load %arg15[%c0_72, %c0_73] : memref<24x768xbf16, #tpu.memory_space<vmem>>, vector<8x50xbf16>
    tpu.vector_store %arg15[%c0_72, %c0_73], %80 {strides = array<i32>} : memref<24x768xbf16, #tpu.memory_space<vmem>>, vector<8x50xbf16>,
    %82 = arith.truncf %79 : vector<8x50xf32> to vector<8x50xbf16>
    %c0_74 = arith.constant 0 : index
    %c128_75 = arith.constant 128 : index
    %83 = vector.load %arg15[%c0_74, %c128_75] : memref<24x768xbf16, #tpu.memory_space<vmem>>, vector<8x50xbf16>
    tpu.vector_store %arg15[%c0_74, %c128_75], %82 {strides = array<i32>} : memref<24x768xbf16, #tpu.memory_space<vmem>>, vector<8x50xbf16>,
    %c0_76 = arith.constant 0 : index
    %c0_77 = arith.constant 0 : index
    %84 = vector.load %arg15[%c0_76, %c0_77] : memref<24x768xbf16, #tpu.memory_space<vmem>>, vector<8x256xbf16>
    %c0_78 = arith.constant 0 : index
    %c0_79 = arith.constant 0 : index
    %85 = vector.load %arg8[%c0_78, %c0_79] : memref<256x25xbf16, #tpu.memory_space<vmem>>, vector<256x25xbf16>
    %cst_80 = arith.constant dense<0.000000e+00> : vector<8x25xf32>
    %86 = tpu.matmul %84, %85, %cst_80 {dimension_numbers = #tpu.dot_dimension_numbers<[1], [0], [0], [1], [0, 0, 1, 1], [], []>} : vector<8x256xbf16>, vector<256x25xbf16>, vector<8x25xf32> -> vector<8x25xf32>
    %c0_81 = arith.constant 0 : index
    %c0_82 = arith.constant 0 : index
    %87 = vector.load %arg9[%c0_81, %c0_82] : memref<1x25xf32, #tpu.memory_space<vmem>>, vector<1x25xf32>
    %88 = vector.broadcast %87 : vector<1x25xf32> to vector<8x25xf32>
    %89 = arith.addf %86, %88 : vector<8x25xf32>
    %cst_83 = arith.constant 0.000000e+00 : f32
    %90 = vector.broadcast %cst_83 : f32 to vector<8x25xf32>
    %91 = arith.maximumf %89, %90 : vector<8x25xf32>
    %92 = arith.truncf %91 : vector<8x25xf32> to vector<8x25xbf16>
    %c0_84 = arith.constant 0 : index
    %c0_85 = arith.constant 0 : index
    %93 = vector.load %arg10[%c0_84, %c0_85] : memref<25x32xbf16, #tpu.memory_space<vmem>>, vector<25x32xbf16>
    %cst_86 = arith.constant dense<0.000000e+00> : vector<8x32xf32>
    %94 = tpu.matmul %92, %93, %cst_86 {dimension_numbers = #tpu.dot_dimension_numbers<[1], [0], [0], [1], [0, 0, 1, 1], [], []>} : vector<8x25xbf16>, vector<25x32xbf16>, vector<8x32xf32> -> vector<8x32xf32>
    %c0_87 = arith.constant 0 : index
    %c0_88 = arith.constant 0 : index
    %95 = vector.load %arg11[%c0_87, %c0_88] : memref<1x32xf32, #tpu.memory_space<vmem>>, vector<1x32xf32>
    %96 = vector.broadcast %95 : vector<1x32xf32> to vector<8x32xf32>
    %97 = arith.addf %94, %96 : vector<8x32xf32>
    %cst_89 = arith.constant 0.000000e+00 : f32
    %98 = vector.broadcast %cst_89 : f32 to vector<8x32xf32>
    %99 = arith.maximumf %97, %98 : vector<8x32xf32>
    %100 = arith.truncf %99 : vector<8x32xf32> to vector<8x32xbf16>
    %c0_90 = arith.constant 0 : index
    %c0_91 = arith.constant 0 : index
    %101 = vector.load %arg12[%c0_90, %c0_91] : memref<32x128xbf16, #tpu.memory_space<vmem>>, vector<32x128xbf16>
    %cst_92 = arith.constant dense<0.000000e+00> : vector<8x128xf32>
    %102 = tpu.matmul %100, %101, %cst_92 {dimension_numbers = #tpu.dot_dimension_numbers<[1], [0], [0], [1], [0, 0, 1, 1], [], []>} : vector<8x32xbf16>, vector<32x128xbf16>, vector<8x128xf32> -> vector<8x128xf32>
    %c0_93 = arith.constant 0 : index
    %c0_94 = arith.constant 0 : index
    %103 = vector.load %arg13[%c0_93, %c0_94] : memref<1x128xf32, #tpu.memory_space<vmem>>, vector<1x128xf32>
    %104 = vector.broadcast %103 : vector<1x128xf32> to vector<8x128xf32>
    %105 = arith.addf %102, %104 : vector<8x128xf32>
    %c0_95 = arith.constant 0 : index
    %c0_96 = arith.constant 0 : index
    %106 = vector.load %arg14[%c0_95, %c0_96] : memref<8x128xf32, #tpu.memory_space<vmem>>, vector<8x128xf32>
    tpu.vector_store %arg14[%c0_95, %c0_96], %105 {strides = array<i32>} : memref<8x128xf32, #tpu.memory_space<vmem>>, vector<8x128xf32>,
    return
  }
  func.func @transform_0(%arg0: i32) -> (i32, i32, i32) {
    %c0_i32 = arith.constant 0 : i32
    %c0_i32_0 = arith.constant 0 : i32
    %c0_i32_1 = arith.constant 0 : i32
    return %c0_i32, %arg0, %c0_i32_0 : i32, i32, i32
  }
  func.func @transform_1(%arg0: i32) -> (i32, i32) {
    %c0_i32 = arith.constant 0 : i32
    %c0_i32_0 = arith.constant 0 : i32
    %c0_i32_1 = arith.constant 0 : i32
    return %c0_i32, %c0_i32_0 : i32, i32
  }
  func.func @transform_2(%arg0: i32) -> (i32, i32) {
    %c0_i32 = arith.constant 0 : i32
    %c0_i32_0 = arith.constant 0 : i32
    %c0_i32_1 = arith.constant 0 : i32
    return %c0_i32, %c0_i32_0 : i32, i32
  }
  func.func @transform_3(%arg0: i32) -> (i32, i32) {
    %c0_i32 = arith.constant 0 : i32
    %c0_i32_0 = arith.constant 0 : i32
    %c0_i32_1 = arith.constant 0 : i32
    return %c0_i32, %c0_i32_0 : i32, i32
  }
  func.func @transform_4(%arg0: i32) -> (i32, i32) {
    %c0_i32 = arith.constant 0 : i32
    %c0_i32_0 = arith.constant 0 : i32
    %c0_i32_1 = arith.constant 0 : i32
    return %c0_i32, %c0_i32_0 : i32, i32
  }
  func.func @transform_5(%arg0: i32) -> (i32, i32) {
    %c0_i32 = arith.constant 0 : i32
    %c0_i32_0 = arith.constant 0 : i32
    %c0_i32_1 = arith.constant 0 : i32
    return %c0_i32, %c0_i32_0 : i32, i32
  }
  func.func @transform_6(%arg0: i32) -> (i32, i32) {
    %c0_i32 = arith.constant 0 : i32
    %c0_i32_0 = arith.constant 0 : i32
    %c0_i32_1 = arith.constant 0 : i32
    return %c0_i32, %c0_i32_0 : i32, i32
  }
  func.func @transform_7(%arg0: i32) -> (i32, i32) {
    %c0_i32 = arith.constant 0 : i32
    %c0_i32_0 = arith.constant 0 : i32
    %c0_i32_1 = arith.constant 0 : i32
    return %c0_i32, %c0_i32_0 : i32, i32
  }
  func.func @transform_8(%arg0: i32) -> (i32, i32) {
    %c0_i32 = arith.constant 0 : i32
    %c0_i32_0 = arith.constant 0 : i32
    %c0_i32_1 = arith.constant 0 : i32
    return %c0_i32, %c0_i32_0 : i32, i32
  }
  func.func @transform_9(%arg0: i32) -> (i32, i32) {
    %c0_i32 = arith.constant 0 : i32
    %c0_i32_0 = arith.constant 0 : i32
    %c0_i32_1 = arith.constant 0 : i32
    return %c0_i32, %c0_i32_0 : i32, i32
  }
  func.func @transform_10(%arg0: i32) -> (i32, i32) {
    %c0_i32 = arith.constant 0 : i32
    %c0_i32_0 = arith.constant 0 : i32
    %c0_i32_1 = arith.constant 0 : i32
    return %c0_i32, %c0_i32_0 : i32, i32
  }
  func.func @transform_11(%arg0: i32) -> (i32, i32) {
    %c0_i32 = arith.constant 0 : i32
    %c0_i32_0 = arith.constant 0 : i32
    %c0_i32_1 = arith.constant 0 : i32
    return %c0_i32, %c0_i32_0 : i32, i32
  }
  func.func @transform_12(%arg0: i32) -> (i32, i32) {
    %c0_i32 = arith.constant 0 : i32
    %c0_i32_0 = arith.constant 0 : i32
    %c0_i32_1 = arith.constant 0 : i32
    return %c0_i32, %c0_i32_0 : i32, i32
  }
  func.func @transform_13(%arg0: i32) -> (i32, i32) {
    %c0_i32 = arith.constant 0 : i32
    %c0_i32_0 = arith.constant 0 : i32
    return %arg0, %c0_i32 : i32, i32
  }
}

</mosaic_0001>

<bundles_post_ra>
// kernel: tpu_custom_call.1
= control target key start
LH: loop header
LB: loop body
LE: loop exit
PB: predicated region body
PF: predicated region fallthrough
CT: control target
= control target key end

     0   :  { %v2477_v2 = vmov 0   ;;  %s3141_s0 = inlined_call_operand.vmem [shape: bf16[3,8,256], index: 0, kind: input, shape index: {}]   ;;  %s3142_s1 = inlined_call_operand.vmem [shape: bf16[768,150], index: 1, kind: input, shape index: {}]   ;;  %s3143_s2 = inlined_call_operand.vmem [shape: f32[1,150], index: 2, kind: input, shape index: {}]   ;;  %s3144_s3 = inlined_call_operand.vmem [shape: bf16[512,100], index: 3, kind: input, shape index: {}]   ;;  %s3145_s4 = inlined_call_operand.vmem [shape: f32[1,100], index: 4, kind: input, shape index: {}]   ;;  %s3146_s5 = inlined_call_operand.vmem [shape: bf16[256,50], index: 5, kind: input, shape index: {}]   ;;  %s3147_s6 = inlined_call_operand.vmem [shape: f32[1,50], index: 6, kind: input, shape index: {}]   ;;  %s3148_s7 = inlined_call_operand.vmem [shape: bf16[256,25], index: 7, kind: input, shape index: {}]   ;;  %s3149_s8 = inlined_call_operand.vmem [shape: f32[1,25], index: 8, kind: input, shape index: {}]   ;;  %s3150_s9 = inlined_call_operand.vmem [shape: bf16[25,32], index: 9, kind: input, shape index: {}]   ;;  %s3151_s10 = inlined_call_operand.vmem [shape: f32[1,32], index: 10, kind: input, shape index: {}]   ;;  %s3152_s11 = inlined_call_operand.vmem [shape: bf16[32,128], index: 11, kind: input, shape index: {}]   ;;  %s3153_s12 = inlined_call_operand.vmem [shape: f32[1,128], index: 12, kind: input, shape index: {}]   ;;  %s3154_s13 = inlined_call_operand.hbm [shape: f32[8,128], index: 13, kind: output, shape index: {}]  }
   0x1   :  { %v2221_v0 = vld [vmem:[%s3142_s1 + $0x4] ss:$8 sps:$4 sm:$0xff]   ;;  %v2223_v1 = vld [vmem:[%s3142_s1] ss:$8 sps:$4 sm:$0xff]   ;;  %59 = vst [vmem:[#allocation2 + $0x40] sm:$0xff] %v2477_v2  ;;  %871 = vst [vmem:[#allocation2] sm:$0xff] %v2477_v2 }
   0x2   :  { %708 = vmatprep.subr.bf16.mxu0 %v2221_v0  ;;  %v2224_v3 = vld [vmem:[%s3142_s1 + $0x14] ss:$8 sps:$4 sm:$0xff]   ;;  %1300 = vst [vmem:[#allocation2] sm:$0xf] %v2477_v2  ;;  %v2226_v4 = vld [vmem:[%s3142_s1 + $0x10] ss:$8 sps:$4 sm:$0xff]  }
   0x3   :  { %709 = vmatpush1.bf16.msra.mxu0 %v2223_v1  ;;  %v2227_v5 = vld [vmem:[%s3142_s1 + $0x24] ss:$8 sps:$4 sm:$0xff]   ;;  %v2229_v6 = vld [vmem:[%s3142_s1 + $0x20] ss:$8 sps:$4 sm:$0xff]   ;;  %v2230_v7 = vld [vmem:[%s3142_s1 + $0x34] ss:$8 sps:$4 sm:$0xff]  }
   0x4   :  { %710 = vmatprep.subr.bf16.mxu0 %v2224_v3  ;;  %v2232_v8 = vld [vmem:[%s3142_s1 + $0x30] ss:$8 sps:$4 sm:$0xff]   ;;  %v2233_v9 = vld [vmem:[%s3142_s1 + $0x44] ss:$8 sps:$4 sm:$0xff]   ;;  %v2235_v10 = vld [vmem:[%s3142_s1 + $0x40] ss:$8 sps:$4 sm:$0xff]  }
   0x5   :  { %v2236_v11 = vld [vmem:[%s3142_s1 + $0x54] ss:$8 sps:$4 sm:$0xff]   ;;  %v2238_v12 = vld [vmem:[%s3142_s1 + $0x50] ss:$8 sps:$4 sm:$0xff]   ;;  %v2239_v13 = vld [vmem:[%s3142_s1 + $0x64] ss:$8 sps:$4 sm:$0xff]  }
   0x6   :  { %v2597_v14 = vld [vmem:[%s3141_s0] sm:$0xff]  ;;  %v2242_v17 = vld [vmem:[%s3142_s1 + $0x74] ss:$8 sps:$4 sm:$0xff]   ;;  %v2244_v18 = vld [vmem:[%s3142_s1 + $0x70] ss:$8 sps:$4 sm:$0xff]  }
   0x7   :  { %711 = vmatpush1.bf16.msra.mxu0 %v2226_v4  ;;  %52 = vst [vmem:[#allocation2 + $0x8] sm:$0xff] %v2597_v14  ;;  %54 = vst [vmem:[#allocation2 + $0x18] sm:$0xff] %v2597_v14  ;;  %v1866_v15 = vcombine.high %v2477_v2, %v2597_v14  ;;  %v2241_v16 = vld [vmem:[%s3142_s1 + $0x60] ss:$8 sps:$4 sm:$0xff]   ;;  %v2245_v19 = vld [vmem:[%s3142_s1 + $0x84] ss:$8 sps:$4 sm:$0xff]   ;;  %v1865_v38 = vcombine.low %v2477_v2, %v2597_v14 }
   0x8   :  { %712 = vmatprep.subr.bf16.mxu0 %v2227_v5  ;;  %v2247_v20 = vld [vmem:[%s3142_s1 + $0x80] ss:$8 sps:$4 sm:$0xff]   ;;  %v2248_v21 = vld [vmem:[%s3142_s1 + $0x94] ss:$8 sps:$4 sm:$0xff]   ;;  %v2250_v22 = vld [vmem:[%s3142_s1 + $0x90] ss:$8 sps:$4 sm:$0xff]  }
   0x9   :  { %740 = vmatprep.mubr.bf16.mxu0 %v1866_v15  ;;  %v2251_v23 = vld [vmem:[%s3142_s1 + $0xa4] ss:$8 sps:$4 sm:$0xff]   ;;  %v2253_v24 = vld [vmem:[%s3142_s1 + $0xa0] ss:$8 sps:$4 sm:$0xff]   ;;  %v2254_v25 = vld [vmem:[%s3142_s1 + $0xb4] ss:$8 sps:$4 sm:$0xff]  }
   0xa   :  { %v2636_v26 = vld [vmem:[%s3141_s0 + $0x8] sm:$0xff]  ;;  %v2256_v28 = vld [vmem:[%s3142_s1 + $0xb0] ss:$8 sps:$4 sm:$0xff]   ;;  %v2260_v31 = vld [vmem:[%s3142_s1 + $0xd4] ss:$8 sps:$4 sm:$0xff]  }
   0xb   :  { %713 = vmatpush1.bf16.msra.mxu0 %v2229_v6  ;;  %57 = vst [vmem:[#allocation2 + $0x30] sm:$0xff] %v2636_v26  ;;  %55 = vst [vmem:[#allocation2 + $0x20] sm:$0xff] %v2636_v26  ;;  %v1867_v27 = vcombine.low %v2597_v14, %v2636_v26  ;;  %v2257_v29 = vld [vmem:[%s3142_s1 + $0xc4] ss:$8 sps:$4 sm:$0xff]   ;;  %v2259_v30 = vld [vmem:[%s3142_s1 + $0xc0] ss:$8 sps:$4 sm:$0xff]   ;;  %v1872_v41 = vcombine.high %v2636_v26, %v2636_v26  ;;  %v1871_v49 = vcombine.low %v2636_v26, %v2636_v26 }
   0xc   :  { %714 = vmatprep.subr.bf16.mxu0 %v2230_v7  ;;  %v2262_v32 = vld [vmem:[%s3142_s1 + $0xd0] ss:$8 sps:$4 sm:$0xff]   ;;  %v2263_v33 = vld [vmem:[%s3142_s1 + $0xe4] ss:$8 sps:$4 sm:$0xff]   ;;  %v2265_v34 = vld [vmem:[%s3142_s1 + $0xe0] ss:$8 sps:$4 sm:$0xff]   ;;  %v1868_v50 = vcombine.high %v2597_v14, %v2636_v26 }
   0xd   :  { %v2266_v35 = vld [vmem:[%s3142_s1 + $0xf4] ss:$8 sps:$4 sm:$0xff]   ;;  %v2268_v36 = vld [vmem:[%s3142_s1 + $0xf0] ss:$8 sps:$4 sm:$0xff]   ;;  %v2271_v37 = vld [vmem:[%s3142_s1 + $0x104] ss:$8 sps:$4 sm:$0xff]  }
   0xe   :  { %v2677_v39 = vld [vmem:[%s3141_s0 + $0x10] sm:$0xff]  ;;  %v2269_v40 = vld [vmem:[%s3142_s1 + $0x100] ss:$8 sps:$4 sm:$0xff]   ;;  %v2277_v46 = vld [vmem:[%s3142_s1 + $0x124] ss:$8 sps:$4 sm:$0xff]  }
   0xf   :  { %715 = vmatpush1.bf16.msra.mxu0 %v2232_v8  ;;  %v1869_v42 = vcombine.low %v2636_v26, %v2677_v39  ;;  %v1870_v43 = vcombine.high %v2636_v26, %v2677_v39  ;;  %v2274_v44 = vld [vmem:[%s3142_s1 + $0x114] ss:$8 sps:$4 sm:$0xff]   ;;  %v2272_v45 = vld [vmem:[%s3142_s1 + $0x110] ss:$8 sps:$4 sm:$0xff]   ;;  %v2275_v47 = vld [vmem:[%s3142_s1 + $0x120] ss:$8 sps:$4 sm:$0xff]  }
  0x10   :  { %716 = vmatprep.subr.bf16.mxu0 %v2233_v9  ;;  %v2280_v48 = vld [vmem:[%s3142_s1 + $0x134] ss:$8 sps:$4 sm:$0xff]   ;;  %v2373_v51 = vld [vmem:[%s3144_s3 + $0x40] sm:$0xff]   ;;  %v2375_v53 = vld [vmem:[%s3144_s3 + $0x48] sm:$0xff]  }
  0x11   :  { %v2374_v52 = vld [vmem:[%s3144_s3] sm:$0xff]   ;;  %v2278_v54 = vld [vmem:[%s3142_s1 + $0x130] ss:$8 sps:$4 sm:$0xff]   ;;  %2066 = vmatprep.subr.bf16.mxu1 %v2373_v51  ;;  %v2376_v56 = vld [vmem:[%s3144_s3 + $0x8] sm:$0xff]  }
  0x12   :  { %v2283_v55 = vld [vmem:[%s3142_s1 + $0x144] ss:$8 sps:$4 sm:$0xff]   ;;  %v2281_v57 = vld [vmem:[%s3142_s1 + $0x140] ss:$8 sps:$4 sm:$0xff]   ;;  %2067 = vmatpush3.bf16.msra.mxu1 %v2374_v52  ;;  %v2286_v58 = vld [vmem:[%s3142_s1 + $0x154] ss:$8 sps:$4 sm:$0xff]  }
  0x13   :  { %717 = vmatpush1.bf16.msra.mxu0 %v2235_v10  ;;  %2068 = vmatprep.subr.bf16.mxu1 %v2375_v53  ;;  %v2377_v59 = vld [vmem:[%s3144_s3 + $0x50] sm:$0xff]   ;;  %v2289_v62 = vld [vmem:[%s3142_s1 + $0x164] ss:$8 sps:$4 sm:$0xff]   ;;  %v2287_v63 = vld [vmem:[%s3142_s1 + $0x160] ss:$8 sps:$4 sm:$0xff]  }
  0x14   :  { %718 = vmatprep.subr.bf16.mxu0 %v2236_v11  ;;  %v2378_v60 = vld [vmem:[%s3144_s3 + $0x10] sm:$0xff]   ;;  %v2295_v3 = vld [vmem:[%s3142_s1 + $0x184] ss:$8 sps:$4 sm:$0xff]   ;;  %v2293_v4 = vld [vmem:[%s3142_s1 + $0x180] ss:$8 sps:$4 sm:$0xff]  }
  0x15   :  { %v2284_v61 = vld [vmem:[%s3142_s1 + $0x150] ss:$8 sps:$4 sm:$0xff]   ;;  %v2292_v0 = vld [vmem:[%s3142_s1 + $0x174] ss:$8 sps:$4 sm:$0xff]   ;;  %v2301_v7 = vld [vmem:[%s3142_s1 + $0x1a4] ss:$8 sps:$4 sm:$0xff]  }
  0x16   :  { %2069 = vmatpush3.bf16.msra.mxu1 %v2376_v56  ;;  %v2290_v1 = vld [vmem:[%s3142_s1 + $0x170] ss:$8 sps:$4 sm:$0xff]   ;;  %v2298_v5 = vld [vmem:[%s3142_s1 + $0x194] ss:$8 sps:$4 sm:$0xff]   ;;  %v2299_v8 = vld [vmem:[%s3142_s1 + $0x1a0] ss:$8 sps:$4 sm:$0xff]  }
  0x17   :  { %719 = vmatpush1.bf16.msra.mxu0 %v2238_v12  ;;  %2070 = vmatprep.subr.bf16.mxu1 %v2377_v59  ;;  %v2296_v6 = vld [vmem:[%s3142_s1 + $0x190] ss:$8 sps:$4 sm:$0xff]   ;;  %v2304_v9 = vld [vmem:[%s3142_s1 + $0x1b4] ss:$8 sps:$4 sm:$0xff]   ;;  %v2307_v11 = vld [vmem:[%s3142_s1 + $0x1c4] ss:$8 sps:$4 sm:$0xff]  }
  0x18   :  { %720 = vmatprep.subr.bf16.mxu0 %v2239_v13  ;;  %v2302_v10 = vld [vmem:[%s3142_s1 + $0x1b0] ss:$8 sps:$4 sm:$0xff]   ;;  %v2305_v12 = vld [vmem:[%s3142_s1 + $0x1c0] ss:$8 sps:$4 sm:$0xff]   ;;  %v2310_v13 = vld [vmem:[%s3142_s1 + $0x1d4] ss:$8 sps:$4 sm:$0xff]  }
  0x1a   :  { %2071 = vmatpush3.bf16.msra.mxu1 %v2378_v60 }
  0x1b   :  { %721 = vmatpush1.bf16.msra.mxu0 %v2241_v16 }
  0x1c   :  { %722 = vmatprep.subr.bf16.mxu0 %v2242_v17 }
  0x1f   :  { %723 = vmatpush1.bf16.msra.mxu0 %v2244_v18 }
  0x20   :  { %724 = vmatprep.subr.bf16.mxu0 %v2245_v19 }
  0x23   :  { %725 = vmatpush1.bf16.msra.mxu0 %v2247_v20 }
  0x24   :  { %726 = vmatprep.subr.bf16.mxu0 %v2248_v21 }
  0x27   :  { %727 = vmatpush1.bf16.msra.mxu0 %v2250_v22 }
  0x28   :  { %728 = vmatprep.subr.bf16.mxu0 %v2251_v23 }
  0x2b   :  { %729 = vmatpush1.bf16.msra.mxu0 %v2253_v24 }
  0x2c   :  { %730 = vmatprep.subr.bf16.mxu0 %v2254_v25 }
  0x2f   :  { %731 = vmatpush1.bf16.msra.mxu0 %v2256_v28 }
  0x30   :  { %732 = vmatprep.subr.bf16.mxu0 %v2257_v29 }
  0x33   :  { %733 = vmatpush1.bf16.msra.mxu0 %v2259_v30 }
  0x34   :  { %734 = vmatprep.subr.bf16.mxu0 %v2260_v31 }
  0x37   :  { %735 = vmatpush1.bf16.msra.mxu0 %v2262_v32 }
  0x38   :  { %736 = vmatprep.subr.bf16.mxu0 %v2263_v33 }
  0x3b   :  { %737 = vmatpush1.bf16.msra.mxu0 %v2265_v34 }
  0x3c   :  { %738 = vmatprep.subr.bf16.mxu0 %v2266_v35 }
  0x3f   :  { %739 = vmatpush1.bf16.msra.mxu0 %v2268_v36 }
  0x40   :  { %759 = vmatprep.subr.bf16.mxu0 %v2271_v37 }
  0x42   :  { %741 = vmatmul.mubr.bf16.vlgmr.msra.gmra.mrb[0].mxu0 %v1865_v38 }
  0x43   :  { %760 = vmatpush1.bf16.msra.mxu0 %v2269_v40  ;;  %750 = vmatprep.mubr.bf16.mxu0 %v1872_v41 }
  0x44   :  { %761 = vmatprep.subr.bf16.mxu0 %v2274_v44 }
  0x47   :  { %762 = vmatpush1.bf16.msra.mxu0 %v2272_v45 }
  0x48   :  { %763 = vmatprep.subr.bf16.mxu0 %v2277_v46 }
  0x4a   :  { %751 = vmatmul.mubr.bf16.gmra.mrb[4].mxu0 %v1871_v49 }
  0x4b   :  { %764 = vmatpush1.bf16.msra.mxu0 %v2275_v47  ;;  %791 = vmatprep.mubr.bf16.mxu0 %v1868_v50 }
  0x4c   :  { %765 = vmatprep.subr.bf16.mxu0 %v2280_v48 }
  0x4f   :  { %766 = vmatpush1.bf16.msra.mxu0 %v2278_v54 }
  0x50   :  { %767 = vmatprep.subr.bf16.mxu0 %v2283_v55 }
  0x53   :  { %768 = vmatpush1.bf16.msra.mxu0 %v2281_v57 }
  0x54   :  { %769 = vmatprep.subr.bf16.mxu0 %v2286_v58 }
  0x57   :  { %770 = vmatpush1.bf16.msra.mxu0 %v2284_v61 }
  0x58   :  { %771 = vmatprep.subr.bf16.mxu0 %v2289_v62 }
  0x5b   :  { %772 = vmatpush1.bf16.msra.mxu0 %v2287_v63 }
  0x5c   :  { %773 = vmatprep.subr.bf16.mxu0 %v2292_v0 }
  0x5f   :  { %774 = vmatpush1.bf16.msra.mxu0 %v2290_v1 }
  0x60   :  { %775 = vmatprep.subr.bf16.mxu0 %v2295_v3 }
  0x63   :  { %776 = vmatpush1.bf16.msra.mxu0 %v2293_v4 }
  0x64   :  { %777 = vmatprep.subr.bf16.mxu0 %v2298_v5 }
  0x67   :  { %778 = vmatpush1.bf16.msra.mxu0 %v2296_v6 }
  0x68   :  { %779 = vmatprep.subr.bf16.mxu0 %v2301_v7 }
  0x6b   :  { %780 = vmatpush1.bf16.msra.mxu0 %v2299_v8 }
  0x6c   :  { %781 = vmatprep.subr.bf16.mxu0 %v2304_v9 }
  0x6f   :  { %782 = vmatpush1.bf16.msra.mxu0 %v2302_v10 }
  0x70   :  { %783 = vmatprep.subr.bf16.mxu0 %v2307_v11 }
  0x71   :  { %18 = vsyncpa [#allocation4], 0  ;;  %v2308_v15 = vld [vmem:[%s3142_s1 + $0x1d0] ss:$8 sps:$4 sm:$0xff]   ;;  %v2314_v16 = vld [vmem:[%s3142_s1 + $0x1e4] ss:$8 sps:$4 sm:$0xff]   ;;  %v1874_v22 = vcombine.high %v2677_v39, %v2677_v39  ;;  %v1873_v28 = vcombine.low %v2677_v39, %v2677_v39  ;;  %v2908_v56 = vcombine.high %v2477_v2, %v2477_v2  ;;  %v2916_v57 = vcombine.low %v2477_v2, %v2477_v2 }
  0x72   :  { %v2312_v17 = vld [vmem:[%s3142_s1 + $0x1e0] ss:$8 sps:$4 sm:$0xff]   ;;  %v2318_v18 = vld [vmem:[%s3142_s1 + $0x1f4] ss:$8 sps:$4 sm:$0xff]   ;;  %v2316_v19 = vld [vmem:[%s3142_s1 + $0x1f0] ss:$8 sps:$4 sm:$0xff]   ;;  %v167_v1 = vlaneseq }
  0x73   :  { %784 = vmatpush1.bf16.msra.mxu0 %v2305_v12  ;;  %v2323_v20 = vld [vmem:[%s3142_s1 + $0x204] ss:$8 sps:$4 sm:$0xff]   ;;  %v2321_v21 = vld [vmem:[%s3142_s1 + $0x200] ss:$8 sps:$4 sm:$0xff]   ;;  %v2326_v23 = vld [vmem:[%s3142_s1 + $0x214] ss:$8 sps:$4 sm:$0xff]  }
  0x74   :  { %785 = vmatprep.subr.bf16.mxu0 %v2310_v13  ;;  %v2324_v24 = vld [vmem:[%s3142_s1 + $0x210] ss:$8 sps:$4 sm:$0xff]   ;;  %v2329_v25 = vld [vmem:[%s3142_s1 + $0x224] ss:$8 sps:$4 sm:$0xff]   ;;  %v2327_v14 = vld [vmem:[%s3142_s1 + $0x220] ss:$8 sps:$4 sm:$0xff]  }
  0x75   :  { %v2330_v29 = vld [vmem:[%s3142_s1 + $0x230] ss:$8 sps:$4 sm:$0xff]   ;;  %v2335_v30 = vld [vmem:[%s3142_s1 + $0x244] ss:$8 sps:$4 sm:$0xff]   ;;  %v2333_v31 = vld [vmem:[%s3142_s1 + $0x240] ss:$8 sps:$4 sm:$0xff]  }
  0x76   :  { %v2338_v32 = vld [vmem:[%s3142_s1 + $0x254] ss:$8 sps:$4 sm:$0xff]   ;;  %v2336_v33 = vld [vmem:[%s3142_s1 + $0x250] ss:$8 sps:$4 sm:$0xff]   ;;  %v2341_v34 = vld [vmem:[%s3142_s1 + $0x264] ss:$8 sps:$4 sm:$0xff]  }
  0x77   :  { %786 = vmatpush1.bf16.msra.mxu0 %v2308_v15  ;;  %v2339_v35 = vld [vmem:[%s3142_s1 + $0x260] ss:$8 sps:$4 sm:$0xff]   ;;  %v2344_v36 = vld [vmem:[%s3142_s1 + $0x274] ss:$8 sps:$4 sm:$0xff]   ;;  %v2342_v37 = vld [vmem:[%s3142_s1 + $0x270] ss:$8 sps:$4 sm:$0xff]  }
  0x78   :  { %787 = vmatprep.subr.bf16.mxu0 %v2314_v16  ;;  %v2347_v38 = vld [vmem:[%s3142_s1 + $0x284] ss:$8 sps:$4 sm:$0xff]   ;;  %v2345_v40 = vld [vmem:[%s3142_s1 + $0x280] ss:$8 sps:$4 sm:$0xff]   ;;  %v2350_v41 = vld [vmem:[%s3142_s1 + $0x294] ss:$8 sps:$4 sm:$0xff]  }
  0x79   :  { %v2353_v44 = vld [vmem:[%s3142_s1 + $0x2a4] ss:$8 sps:$4 sm:$0xff]   ;;  %v2351_v45 = vld [vmem:[%s3142_s1 + $0x2a0] ss:$8 sps:$4 sm:$0xff]   ;;  %v2356_v46 = vld [vmem:[%s3142_s1 + $0x2b4] ss:$8 sps:$4 sm:$0xff]  }
  0x7a   :  { %v2354_v47 = vld [vmem:[%s3142_s1 + $0x2b0] ss:$8 sps:$4 sm:$0xff]   ;;  %v2359_v48 = vld [vmem:[%s3142_s1 + $0x2c4] ss:$8 sps:$4 sm:$0xff]   ;;  %v2357_v49 = vld [vmem:[%s3142_s1 + $0x2c0] ss:$8 sps:$4 sm:$0xff]  }
  0x7b   :  { %788 = vmatpush1.bf16.msra.mxu0 %v2312_v17  ;;  %v2362_v50 = vld [vmem:[%s3142_s1 + $0x2d4] ss:$8 sps:$4 sm:$0xff]   ;;  %v2360_v51 = vld [vmem:[%s3142_s1 + $0x2d0] ss:$8 sps:$4 sm:$0xff]   ;;  %v2367_v52 = vld [vmem:[%s3142_s1 + $0x2e4] ss:$8 sps:$4 sm:$0xff]  }
  0x7c   :  { %789 = vmatprep.subr.bf16.mxu0 %v2318_v18  ;;  %v2365_v53 = vld [vmem:[%s3142_s1 + $0x2e0] ss:$8 sps:$4 sm:$0xff]   ;;  %v2370_v54 = vld [vmem:[%s3142_s1 + $0x2f4] ss:$8 sps:$4 sm:$0xff]   ;;  %v2368_v55 = vld [vmem:[%s3142_s1 + $0x2f0] ss:$8 sps:$4 sm:$0xff]  }
  0x7d   :  { %v2379_v58 = vld [vmem:[%s3144_s3 + $0x58] sm:$0xff]   ;;  %v2381_v26 = vld [vmem:[%s3144_s3 + $0x60] sm:$0xff]   ;;  %v2383_v39 = vld [vmem:[%s3144_s3 + $0x68] sm:$0xff]   ;;  %v168_v3 = vshrl.u32 %v167_v1, 7  ;;  %vm880_vm0 = vcmask 1043456   ;;  %vm881_vm1 = vcmask 179204  }
  0x7e   :  { %v2380_v59 = vld [vmem:[%s3144_s3 + $0x18] sm:$0xff]   ;;  %2072 = vmatprep.subr.bf16.mxu1 %v2379_v58  ;;  %v2382_v2 = vld [vmem:[%s3144_s3 + $0x20] sm:$0xff]   ;;  %v2385_v60 = vld [vmem:[%s3144_s3 + $0x70] sm:$0xff]   ;;  %vm1302_vm3 = vcmask 814080   ;;  %vm1518_vm4 = vcmask 404480   ;;  %vm1733_vm5 = vcmask 1044480  }
  0x7f   :  { %790 = vmatpush1.bf16.msra.mxu0 %v2316_v19  ;;  %2073 = vmatpush3.bf16.msra.mxu1 %v2380_v59  ;;  %v2386_v61 = vld [vmem:[%s3144_s3 + $0x30] sm:$0xff]   ;;  %v2387_v62 = vld [vmem:[%s3144_s3 + $0x78] sm:$0xff]   ;;  %v2389_v0 = vld [vmem:[%s3144_s3 + $0xc0] sm:$0xff]   ;;  %v169_v4 = vsub.s32 0, %v168_v3  ;;  %v173_v6 = vsub.s32 1, %v168_v3  ;;  %vm2480_vm6 = vmmov 0  }
  0x80   :  { %810 = vmatprep.subr.bf16.mxu0 %v2323_v20  ;;  %2074 = vmatprep.subr.bf16.mxu1 %v2381_v26  ;;  %v2388_v63 = vld [vmem:[%s3144_s3 + $0x38] sm:$0xff]   ;;  %v165_v5 = vld [vmem:[%s3143_s2] sm:$0x3]  ;;  %vm882_vm2 = vmor %vm881_vm1, %vm880_vm0  ;;  %vm1729_vm7 = vcmask 203776   ;;  %vm1804_vm8 = vcmask 261120   ;;  %s2481_s2 = smov [#allocation3]  }
  0x81   :  { %v170_v7 = vrot.slane %v165_v5, %v169_v4  ;;  %v174_v8 = vrot.slane %v165_v5, %v173_v6  ;;  %v2404_v58 = vld [vmem:[%s3144_s3 + $0xa8] sm:$0xff]   ;;  %v2405_v59 = vld [vmem:[%s3144_s3 + $0xf0] sm:$0xff]   ;;  %v2416_v1 = vld [vmem:[%s3146_s5 + $0x18] sm:$0xff]  }
  0x82   :  { %792 = vmatmul.mubr.bf16.vlgmr.msra.gmra.mrb[0].mxu0 %v1867_v27  ;;  %v2332_v27 = vld [vmem:[%s3142_s1 + $0x234] ss:$8 sps:$4 sm:$0xff]   ;;  %v2417_v3 = vld [vmem:[%s3146_s5 + $0x60] sm:$0xff]   ;;  %v2419_v5 = vld [vmem:[%s3146_s5 + $0x68] sm:$0xff]  }
  0x83   :  { %811 = vmatpush1.bf16.msra.mxu0 %v2321_v21  ;;  %801 = vmatprep.mubr.bf16.mxu0 %v1874_v22  ;;  %v2406_v26 = vld [vmem:[%s3144_s3 + $0xb0] sm:$0xff]   ;;  %v2418_v4 = vld [vmem:[%s3146_s5 + $0x20] sm:$0xff]   ;;  %v2420_v6 = vld [vmem:[%s3146_s5 + $0x28] sm:$0xff]  }
  0x84   :  { %812 = vmatprep.subr.bf16.mxu0 %v2326_v23  ;;  %2075 = vmatpush3.bf16.msra.mxu1 %v2382_v2  ;;  %v2407_v2 = vld [vmem:[%s3144_s3 + $0xf8] sm:$0xff]  }
  0x85   :  { %2076 = vmatprep.subr.bf16.mxu1 %v2383_v39  ;;  %v2408_v39 = vld [vmem:[%s3144_s3 + $0xb8] sm:$0xff]  }
  0x87   :  { %813 = vmatpush1.bf16.msra.mxu0 %v2324_v24 }
  0x88   :  { %814 = vmatprep.subr.bf16.mxu0 %v2329_v25 }
  0x8a   :  { %802 = vmatmul.mubr.bf16.gmra.mrb[4].mxu0 %v1873_v28 }
  0x8b   :  { %815 = vmatpush1.bf16.msra.mxu0 %v2327_v14  ;;  %842 = vmatprep.mubr.bf16.mxu0 %v1870_v43  ;;  %v2348_v43 = vld [vmem:[%s3142_s1 + $0x290] ss:$8 sps:$4 sm:$0xff]  }
  0x8c   :  { %816 = vmatprep.subr.bf16.mxu0 %v2332_v27 }
  0x8f   :  { %817 = vmatpush1.bf16.msra.mxu0 %v2330_v29 }
  0x90   :  { %818 = vmatprep.subr.bf16.mxu0 %v2335_v30 }
  0x93   :  { %819 = vmatpush1.bf16.msra.mxu0 %v2333_v31 }
  0x94   :  { %820 = vmatprep.subr.bf16.mxu0 %v2338_v32 }
  0x97   :  { %821 = vmatpush1.bf16.msra.mxu0 %v2336_v33 }
  0x98   :  { %822 = vmatprep.subr.bf16.mxu0 %v2341_v34 }
  0x9b   :  { %823 = vmatpush1.bf16.msra.mxu0 %v2339_v35 }
  0x9c   :  { %824 = vmatprep.subr.bf16.mxu0 %v2344_v36 }
  0x9f   :  { %825 = vmatpush1.bf16.msra.mxu0 %v2342_v37  ;;  %v2452_v37 = vld [vmem:[#allocation2 + $0x40] sm:$0xff] }
  0xa0   :  { %826 = vmatprep.subr.bf16.mxu0 %v2347_v38 }
  0xa3   :  { %827 = vmatpush1.bf16.msra.mxu0 %v2345_v40 }
  0xa4   :  { %828 = vmatprep.subr.bf16.mxu0 %v2350_v41  ;;  %v2390_v41 = vld [vmem:[%s3144_s3 + $0x80] sm:$0xff]  }
  0xa7   :  { %829 = vmatpush1.bf16.msra.mxu0 %v2348_v43  ;;  %v2391_v43 = vld [vmem:[%s3144_s3 + $0xc8] sm:$0xff]  }
  0xa8   :  { %830 = vmatprep.subr.bf16.mxu0 %v2353_v44  ;;  %v2392_v44 = vld [vmem:[%s3144_s3 + $0x88] sm:$0xff]  }
  0xab   :  { %831 = vmatpush1.bf16.msra.mxu0 %v2351_v45 }
  0xac   :  { %832 = vmatprep.subr.bf16.mxu0 %v2356_v46  ;;  %v2394_v46 = vld [vmem:[%s3144_s3 + $0xd0] sm:$0xff]  }
  0xaf   :  { %833 = vmatpush1.bf16.msra.mxu0 %v2354_v47 }
  0xb0   :  { %834 = vmatprep.subr.bf16.mxu0 %v2359_v48  ;;  %v2395_v48 = vld [vmem:[%s3144_s3 + $0x90] sm:$0xff]  }
  0xb3   :  { %835 = vmatpush1.bf16.msra.mxu0 %v2357_v49 }
  0xb4   :  { %836 = vmatprep.subr.bf16.mxu0 %v2362_v50  ;;  %v2399_v50 = vld [vmem:[%s3144_s3 + $0xd8] sm:$0xff]  }
  0xb7   :  { %837 = vmatpush1.bf16.msra.mxu0 %v2360_v51 }
  0xb8   :  { %838 = vmatprep.subr.bf16.mxu0 %v2367_v52  ;;  %v2400_v52 = vld [vmem:[%s3144_s3 + $0x98] sm:$0xff]  }
  0xbb   :  { %839 = vmatpush1.bf16.msra.mxu0 %v2365_v53  ;;  %v2401_v53 = vld [vmem:[%s3144_s3 + $0xe0] sm:$0xff]  }
  0xbc   :  { %840 = vmatprep.subr.bf16.mxu0 %v2370_v54  ;;  %v2402_v54 = vld [vmem:[%s3144_s3 + $0xa0] sm:$0xff]  }
  0xbf   :  { %841 = vmatpush1.bf16.msra.mxu0 %v2368_v55  ;;  %v2403_v55 = vld [vmem:[%s3144_s3 + $0xe8] sm:$0xff]  }
  0xc2   :  { %843 = vmatmul.mubr.bf16.vlgmr.msra.gmra.mrb[0].mxu0 %v1869_v42  ;;  %v2384_v42 = vld [vmem:[%s3144_s3 + $0x28] sm:$0xff]  }
  0xc3   :  { %852 = vmatprep.mubr.bf16.mxu0 %v2908_v56  ;;  %2077 = vmatpush3.bf16.msra.mxu1 %v2384_v42 }
  0xc4   :  { %2078 = vmatprep.subr.bf16.mxu1 %v2385_v60  ;;  %v2409_v60 = vld [vmem:[%s3146_s5 + $0x40] sm:$0xff]  }
  0xc7   :  { %2079 = vmatpush3.bf16.msra.mxu1 %v2386_v61  ;;  %v2410_v61 = vld [vmem:[%s3146_s5] sm:$0xff]  }
  0xc8   :  { %2080 = vmatprep.subr.bf16.mxu1 %v2387_v62  ;;  %v2411_v62 = vld [vmem:[%s3146_s5 + $0x48] sm:$0xff]  }
  0xca   :  { %853 = vmatmul.mubr.bf16.gmra.mrb[4].mxu0 %v2916_v57 }
  0xcb   :  { %2081 = vmatpush3.bf16.msra.mxu1 %v2388_v63  ;;  %v2414_v63 = vld [vmem:[%s3146_s5 + $0x10] sm:$0xff]  }
  0xcc   :  { %2094 = vmatprep.subr.bf16.mxu1 %v2389_v0  ;;  %v2415_v0 = vld [vmem:[%s3146_s5 + $0x58] sm:$0xff]  }
 0x195   :  { %v844_v9 = vpop.f32.mrb[0].mxu0 }
 0x196   :  { %v2194_v10 = vadd.f32 %v844_v9, %v170_v7  ;;  %v846_v11 = vpop.f32.mrb[1].mxu0  ;;  %v2423_v9 = vld [vmem:[%s3146_s5 + $0x78] sm:$0xff]  }
 0x197   :  { %v2195_v12 = vadd.f32 %v846_v11, %v174_v8  ;;  %v848_v13 = vpop.f32.mrb[2].mxu0  ;;  %v2430_v11 = vld [vmem:[%s3148_s7 + $0x40] sm:$0xff]  }
 0x198   :  { %v2196_v15 = vadd.f32 %v848_v13, %v170_v7  ;;  %v850_v16 = vpop.f32.mrb[3].mxu0  ;;  %v861_v18 = vmax.f32 %v2194_v10, 0.0  ;;  %v2424_v10 = vld [vmem:[%s3146_s5 + $0x38] sm:$0xff]  }
 0x199   :  { %v2197_v17 = vadd.f32 %v850_v16, %v174_v8  ;;  %v862_v20 = vmax.f32 %v2195_v12, 0.0 }
 0x19a   :  { %v863_v19 = vmax.f32 %v2196_v15, 0.0 }
 0x19b   :  { %v864_v21 = vmax.f32 %v2197_v17, 0.0 }
 0x19c   :  { %v867_v22 = vmax.f32 %v861_v18, %v863_v19 }
 0x19d   :  { %v868_v23 = vmax.f32 %v862_v20, %v864_v21  ;;  %v854_v24 = vpop.f32.mrb[4].mxu0 }
 0x19e   :  { %v2198_v25 = vadd.f32 %v854_v24, %v170_v7  ;;  %v856_v28 = vpop.f32.mrb[5].mxu0  ;;  %v2421_v7 = vld [vmem:[%s3146_s5 + $0x70] sm:$0xff]   ;;  %v1975_v24 = vld [vmem:[%s3145_s4] ss:$0 sm:$0xff] }
 0x19f   :  { %v2064_v14 = vpack.c.bf16 %v868_v23, %v867_v22  ;;  %v2199_v27 = vadd.f32 %v856_v28, %v174_v8  ;;  %v858_v29 = vpop.f32.mrb[6].mxu0  ;;  %v2422_v8 = vld [vmem:[%s3146_s5 + $0x30] sm:$0xff]  }
 0x1a0   :  { %v865_v30 = vmax.f32 %v2198_v25, 0.0  ;;  %v859_v31 = vpop.f32.mrb[7].mxu0 }
 0x1a1   :  { %883 = vst.msk [vmem:[#allocation2 + $0x8] sm:$0xff] %vm882_vm2, %v2064_v14  ;;  %884 = vst.msk [vmem:[#allocation2 + $0x18] sm:$0xff] %vm882_vm2, %v2064_v14  ;;  %v866_v32 = vmax.f32 %v2199_v27, 0.0 }
 0x1a2   :  { %v869_v33 = vmax.f32 %v863_v19, %v865_v30 }
 0x1a3   :  { %v870_v34 = vmax.f32 %v864_v21, %v866_v32 }
 0x1a5   :  { %v2065_v35 = vpack.c.bf16 %v870_v34, %v869_v33 }
 0x1a7   :  { %893 = vst.msk [vmem:[#allocation2 + $0x20] sm:$0xff] %vm882_vm2, %v2065_v35  ;;  %894 = vst.msk [vmem:[#allocation2 + $0x30] sm:$0xff] %vm882_vm2, %v2065_v35 }
 0x1a8   :  { %v898_v36 = vld [vmem:[#allocation2 + $0x18] sm:$0xff] }
 0x1a9   :  { %v1977_v38 = vcombine.high %v2452_v37, %v898_v36  ;;  %v1976_v40 = vcombine.low %v2452_v37, %v898_v36 }
 0x1ab   :  { %1231 = vmatprep.mubr.bf16.mxu1 %v1977_v38 }
 0x1ac   :  { %1232 = vmatmul.mubr.bf16.vlgmr.msra.gmra.mrb[0].mxu1 %v1976_v40 }
 0x1ad   :  { %2095 = vmatpush3.bf16.msra.mxu1 %v2390_v41 }
 0x1ae   :  { %2096 = vmatprep.subr.bf16.mxu1 %v2391_v43  ;;  %v900_v45 = vld [vmem:[#allocation2 + $0x30] sm:$0xff]  ;;  %v2398_v51 = vld [vmem:[#allocation2 + $0xc] ss:$24 sps:$4 sm:$0xff]   ;;  %v2396_v42 = vld [vmem:[#allocation2 + $0x8] ss:$24 sps:$4 sm:$0xff]  }
 0x1af   :  { %v1981_v47 = vcombine.high %v900_v45, %v900_v45  ;;  %1308 = vst [vmem:[#allocation2 + $0x34] sm:$0xf] %v2452_v37  ;;  %v1980_v49 = vcombine.low %v900_v45, %v900_v45 }
 0x1b1   :  { %2097 = vmatpush3.bf16.msra.mxu1 %v2392_v44  ;;  %1239 = vmatprep.mubr.bf16.mxu1 %v1981_v47 }
 0x1b2   :  { %2098 = vmatprep.subr.bf16.mxu1 %v2394_v46 }
 0x1b4   :  { %1240 = vmatmul.mubr.bf16.gmra.mrb[4].mxu1 %v1980_v49 }
 0x1b5   :  { %2099 = vmatpush3.bf16.msra.mxu1 %v2395_v48  ;;  %1279 = vmatprep.mubr.bf16.mxu1 %v2398_v51 }
 0x1b6   :  { %2100 = vmatprep.subr.bf16.mxu1 %v2399_v50 }
 0x1b9   :  { %2101 = vmatpush3.bf16.msra.mxu1 %v2400_v52 }
 0x1ba   :  { %2102 = vmatprep.subr.bf16.mxu1 %v2401_v53 }
 0x1bd   :  { %2103 = vmatpush3.bf16.msra.mxu1 %v2402_v54 }
 0x1be   :  { %2104 = vmatprep.subr.bf16.mxu1 %v2403_v55 }
 0x1c1   :  { %2105 = vmatpush3.bf16.msra.mxu1 %v2404_v58  ;;  %v2431_v58 = vld [vmem:[%s3148_s7] sm:$0xff]  }
 0x1c2   :  { %2106 = vmatprep.subr.bf16.mxu1 %v2405_v59  ;;  %v2432_v59 = vld [vmem:[%s3148_s7 + $0x48] sm:$0xff]  }
 0x1c5   :  { %2107 = vmatpush3.bf16.msra.mxu1 %v2406_v26  ;;  %v2433_v26 = vld [vmem:[%s3148_s7 + $0x8] sm:$0xff]  }
 0x1c6   :  { %2108 = vmatprep.subr.bf16.mxu1 %v2407_v2  ;;  %v2434_v2 = vld [vmem:[%s3148_s7 + $0x50] sm:$0xff]  }
 0x1c9   :  { %2109 = vmatpush3.bf16.msra.mxu1 %v2408_v39  ;;  %v2435_v39 = vld [vmem:[%s3148_s7 + $0x10] sm:$0xff]  }
 0x1ca   :  { %2122 = vmatprep.subr.bf16.mxu1 %v2409_v60  ;;  %v2437_v60 = vld [vmem:[%s3148_s7 + $0x18] sm:$0xff]  }
 0x1cc   :  { %1280 = vmatmul.mubr.bf16.vlgmr.msra.gmra.mrb[8].mxu1 %v2396_v42  ;;  %v2436_v42 = vld [vmem:[%s3148_s7 + $0x58] sm:$0xff]  }
 0x1cd   :  { %1287 = vmatprep.mubr.bf16.mxu1 %v2908_v56  ;;  %2123 = vmatpush3.bf16.msra.mxu1 %v2410_v61  ;;  %v2412_v56 = vld [vmem:[%s3146_s5 + $0x8] sm:$0xff]   ;;  %v2438_v61 = vld [vmem:[%s3148_s7 + $0x60] sm:$0xff]  }
 0x1ce   :  { %2124 = vmatprep.subr.bf16.mxu1 %v2411_v62  ;;  %v2439_v62 = vld [vmem:[%s3148_s7 + $0x20] sm:$0xff]  }
 0x1d1   :  { %2125 = vmatpush3.bf16.msra.mxu1 %v2412_v56  ;;  %v2440_v56 = vld [vmem:[%s3148_s7 + $0x68] sm:$0xff]  }
 0x1d4   :  { %1288 = vmatmul.mubr.bf16.gmra.mrb[12].mxu1 %v2916_v57  ;;  %v2413_v57 = vld [vmem:[%s3146_s5 + $0x50] sm:$0xff]  }
 0x1d5   :  { %2126 = vmatprep.subr.bf16.mxu1 %v2413_v57  ;;  %v2441_v57 = vld [vmem:[%s3148_s7 + $0x28] sm:$0xff]  }
 0x1d6   :  { %2127 = vmatpush3.bf16.msra.mxu1 %v2414_v63  ;;  %v2442_v63 = vld [vmem:[%s3148_s7 + $0x70] sm:$0xff]  }
 0x1d7   :  { %2128 = vmatprep.subr.bf16.mxu1 %v2415_v0  ;;  %v2443_v0 = vld [vmem:[%s3148_s7 + $0x30] sm:$0xff]  }
 0x1da   :  { %2129 = vmatpush3.bf16.msra.mxu1 %v2416_v1  ;;  %v2444_v1 = vld [vmem:[%s3148_s7 + $0x78] sm:$0xff]  }
 0x1db   :  { %2130 = vmatprep.subr.bf16.mxu1 %v2417_v3  ;;  %v2445_v3 = vld [vmem:[%s3148_s7 + $0x38] sm:$0xff]  }
 0x1de   :  { %2131 = vmatpush3.bf16.msra.mxu1 %v2418_v4 }
 0x1df   :  { %2132 = vmatprep.subr.bf16.mxu1 %v2419_v5  ;;  %v2016_v5 = vld [vmem:[%s3147_s6] ss:$0 sm:$0xff] }
 0x1e2   :  { %2133 = vmatpush3.bf16.msra.mxu1 %v2420_v6 }
 0x1e3   :  { %2134 = vmatprep.subr.bf16.mxu1 %v2421_v7 }
 0x1e6   :  { %2135 = vmatpush3.bf16.msra.mxu1 %v2422_v8 }
 0x1e7   :  { %2136 = vmatprep.subr.bf16.mxu1 %v2423_v9 }
 0x1ea   :  { %2137 = vmatpush3.bf16.msra.mxu1 %v2424_v10 }
 0x1eb   :  { %2150 = vmatprep.subr.bf16.mxu1 %v2430_v11 }
 0x27f   :  { %v2082_v12 = vpop.f32.mrb[0].mxu1 }
 0x280   :  { %v2083_v13 = vpop.f32.mrb[1].mxu1 }
 0x281   :  { %v2084_v15 = vadd.f32 %v2083_v13, %v2082_v12  ;;  %v2085_v16 = vpop.f32.mrb[2].mxu1 }
 0x282   :  { %v2086_v17 = vpop.f32.mrb[3].mxu1 }
 0x283   :  { %v2087_v18 = vadd.f32 %v2086_v17, %v2085_v16  ;;  %v1234_v14 = vadd.f32 %v2084_v15, %v1975_v24 }
 0x285   :  { %v1237_v31 = vadd.f32 %v2087_v18, %v1975_v24 }
 0x287   :  { %v2088_v19 = vpop.f32.mrb[4].mxu1 }
 0x288   :  { %v2089_v20 = vpop.f32.mrb[5].mxu1 }
 0x289   :  { %v2090_v21 = vadd.f32 %v2089_v20, %v2088_v19  ;;  %v2091_v22 = vpop.f32.mrb[6].mxu1 }
 0x28a   :  { %v2092_v23 = vpop.f32.mrb[7].mxu1 }
 0x28b   :  { %v1242_v40 = vadd.f32 %v2090_v21, %v1975_v24 }
 0x29f   :  { %v2110_v25 = vpop.f32.mrb[8].mxu1 }
 0x2a0   :  { %v2111_v28 = vpop.f32.mrb[9].mxu1 }
 0x2a1   :  { %v2112_v27 = vadd.f32 %v2111_v28, %v2110_v25  ;;  %v2113_v29 = vpop.f32.mrb[10].mxu1 }
 0x2a2   :  { %v2114_v30 = vpop.f32.mrb[11].mxu1 }
 0x2a3   :  { %v1282_v32 = vadd.f32 %v2112_v27, %v1234_v14  ;;  %v2115_v33 = vadd.f32 %v2114_v30, %v2113_v29  ;;  %v2448_v30 = vld [vmem:[%s3150_s9] sm:$0xff]  }
 0x2a5   :  { %v1285_v34 = vadd.f32 %v2115_v33, %v1237_v31  ;;  %v1295_v35 = vmax.f32 %v1282_v32, 0.0  ;;  %v2478_v31 = vmov 0.0   ;;  %v2449_v32 = vld [vmem:[%s3150_s9 + $0x8] sm:$0x1f]   ;;  %v2479_v33 = vmov 65535  }
 0x2a7   :  { %v1296_v36 = vmax.f32 %v1285_v34, 0.0  ;;  %v2116_v37 = vpop.f32.mrb[12].mxu1  ;;  %v1734_v34 = vsel %vm880_vm0, 4294967295, %v2479_v33 }
 0x2a8   :  { %v2117_v38 = vpop.f32.mrb[13].mxu1 }
 0x2a9   :  { %v1298_v41 = vmax.f32 %v1295_v35, %v1296_v36  ;;  %v2118_v43 = vadd.f32 %v2117_v38, %v2116_v37  ;;  %v2119_v44 = vpop.f32.mrb[14].mxu1  ;;  %v1735_v35 = vsel %vm1733_vm5, %v1734_v34, 0  ;;  %v2037_v38 = vld [vmem:[%s3149_s8] ss:$0 sm:$0xff] }
 0x2aa   :  { %v2120_v45 = vpop.f32.mrb[15].mxu1 }
 0x2ab   :  { %v1301_v46 = vpack.c.bf16 %v1298_v41, %v1298_v41  ;;  %v1290_v47 = vadd.f32 %v2118_v43, %v1242_v40 }
 0x2ad   :  { %1303 = vst.msk [vmem:[#allocation2 + $0x4] sm:$0xf] %vm1302_vm3, %v1301_v46  ;;  %1304 = vst.msk [vmem:[#allocation2 + $0x18] sm:$0xf] %vm1302_vm3, %v1301_v46  ;;  %v1297_v48 = vmax.f32 %v1290_v47, 0.0  ;;  %v2450_v47 = vld [vmem:[%s3152_s11] sm:$0xff]  }
 0x2af   :  { %v1299_v49 = vmax.f32 %v1296_v36, %v1297_v48  ;;  %v1737_v36 = vand.u32 %v2449_v32, %v1735_v35 }
 0x2b1   :  { %v1305_v50 = vpack.c.bf16 %v1299_v49, %v1299_v49  ;;  %v2451_v49 = vld [vmem:[%s3152_s11 + $0x8] sm:$0xff]   ;;  %s1855_s11 = sshll.u32 %s2481_s2, 4  ;;  %s1856_s11 = int_to_ptr.vmem [resolvable:$true] %s1855_s11 }
 0x2b2   :  { %p2458_p1 = scmp.lt.s32.totalorder %s1856_s11, %s1856_s11 }
 0x2b3   :  { %1306 = vst.msk [vmem:[#allocation2 + $0x1c] sm:$0xf] %vm1302_vm3, %v1305_v50  ;;  %1307 = vst.msk [vmem:[#allocation2 + $0x30] sm:$0xf] %vm1302_vm3, %v1305_v50  ;;  %v2056_v50 = vld [vmem:[%s3151_s10] ss:$0 sm:$0xff] }
 0x2b4   :  { %v2425_v51 = vld [vmem:[#allocation2] ss:$24 sps:$4 sm:$0xff]   ;;  %s2453_s10 = scalar_lea.vmem %s1856_s11, 128 }
 0x2b5   :  { %p2454_p0 = scmp.ne.s32.totalorder %s1856_s11, %s2453_s10  ;;  %p2459_p2 = scmp.lt.s32.totalorder %s2453_s10, %s2453_s10 }
 0x2b7   :  { %p2460_p3 = por %p2459_p2, %p2458_p1 }
 0x2b9   :  { %p2461_p4 = pnand %p2460_p3, %p2454_p0 }
 0x2ba   :  { %v2427_v52 = vld [vmem:[#allocation2 + $0x4] ss:$24 sps:$4 sm:$0xff]   ;;  %v1311_v53 = vld [vmem:[#allocation2 + $0x30] sm:$0xff] }
 0x2bb   :  { %1496 = vmatprep.mubr.bf16.mxu1 %v2427_v52  ;;  %v2020_v54 = vcombine.high %v1311_v53, %v1311_v53  ;;  %v2019_v55 = vcombine.low %v1311_v53, %v1311_v53 }
 0x2bc   :  { %1497 = vmatmul.mubr.bf16.vlgmr.msra.gmra.mrb[16].mxu1 %v2425_v51 }
 0x2bd   :  { %1504 = vmatprep.mubr.bf16.mxu1 %v2020_v54  ;;  %2151 = vmatpush3.bf16.msra.mxu1 %v2431_v58 }
 0x2be   :  { %2152 = vmatprep.subr.bf16.mxu1 %v2432_v59 }
 0x2c1   :  { %2153 = vmatpush3.bf16.msra.mxu1 %v2433_v26  ;;  %v2060_v26 = vld [vmem:[%s3153_s12] ss:$0 sm:$0xff] }
 0x2c2   :  { %2154 = vmatprep.subr.bf16.mxu1 %v2434_v2 }
 0x2c4   :  { %1505 = vmatmul.mubr.bf16.gmra.mrb[20].mxu1 %v2019_v55 }
 0x2c5   :  { %2155 = vmatpush3.bf16.msra.mxu1 %v2435_v39 }
 0x2c6   :  { %2156 = vmatprep.subr.bf16.mxu1 %v2436_v42 }
 0x2c9   :  { %2157 = vmatpush3.bf16.msra.mxu1 %v2437_v60 }
 0x2ca   :  { %2158 = vmatprep.subr.bf16.mxu1 %v2438_v61 }
 0x2cd   :  { %2159 = vmatpush3.bf16.msra.mxu1 %v2439_v62 }
 0x2ce   :  { %2160 = vmatprep.subr.bf16.mxu1 %v2440_v56 }
 0x2d1   :  { %2161 = vmatpush3.bf16.msra.mxu1 %v2441_v57 }
 0x2d2   :  { %2162 = vmatprep.subr.bf16.mxu1 %v2442_v63 }
 0x2d5   :  { %2163 = vmatpush3.bf16.msra.mxu1 %v2443_v0 }
 0x2d6   :  { %2164 = vmatprep.subr.bf16.mxu1 %v2444_v1 }
 0x2d9   :  { %2165 = vmatpush3.bf16.msra.mxu1 %v2445_v3 }
 0x2da   :  { %2178 = vmatprep.subr.bf16.mxu1 %v2478_v31 }
 0x38f   :  { %v2138_v4 = vpop.f32.mrb[16].mxu1 }
 0x390   :  { %v2139_v6 = vpop.f32.mrb[17].mxu1 }
 0x391   :  { %v2140_v7 = vadd.f32 %v2139_v6, %v2138_v4  ;;  %v2141_v8 = vpop.f32.mrb[18].mxu1 }
 0x392   :  { %v2142_v9 = vpop.f32.mrb[19].mxu1 }
 0x393   :  { %v1499_v10 = vadd.f32 %v2140_v7, %v2016_v5  ;;  %v2143_v11 = vadd.f32 %v2142_v9, %v2141_v8 }
 0x395   :  { %v1502_v12 = vadd.f32 %v2143_v11, %v2016_v5  ;;  %v1512_v13 = vmax.f32 %v1499_v10, 0.0 }
 0x397   :  { %v1513_v15 = vmax.f32 %v1502_v12, 0.0  ;;  %v2144_v16 = vpop.f32.mrb[20].mxu1 }
 0x398   :  { %v2145_v17 = vpop.f32.mrb[21].mxu1 }
 0x399   :  { %v1515_v18 = vmax.f32 %v1512_v13, %v1513_v15  ;;  %v2146_v19 = vadd.f32 %v2145_v17, %v2144_v16  ;;  %v2147_v20 = vpop.f32.mrb[22].mxu1 }
 0x39a   :  { %v2148_v21 = vpop.f32.mrb[23].mxu1 }
 0x39b   :  { %v1517_v22 = vpack.c.bf16 %v1515_v18, %v1515_v18  ;;  %v1507_v23 = vadd.f32 %v2146_v19, %v2016_v5 }
 0x39d   :  { %1519 = vst.msk [vmem:[#allocation2] sm:$0xf] %vm1518_vm4, %v1517_v22  ;;  %v1514_v24 = vmax.f32 %v1507_v23, 0.0 }
 0x39f   :  { %v1516_v25 = vmax.f32 %v1513_v15, %v1514_v24 }
 0x3a1   :  { %v1520_v28 = vpack.c.bf16 %v1516_v25, %v1516_v25 }
 0x3a3   :  { %1521 = vst.msk [vmem:[#allocation2 + $0x4] sm:$0xf] %vm1518_vm4, %v1520_v28 }
 0x3aa   :  { %v1522_v14 = vld [vmem:[#allocation2] sm:$0xff] }
 0x3ab   :  { %v2038_v27 = vcombine.low %v1522_v14, %v1522_v14  ;;  %v2039_v29 = vcombine.high %v1522_v14, %v1522_v14 }
 0x3ad   :  { %1697 = vmatprep.mubr.bf16.mxu1 %v2039_v29 }
 0x3ae   :  { %1698 = vmatmul.mubr.bf16.vlgmr.msra.gmra.mrb[24].mxu1 %v2038_v27 }
 0x3af   :  { %2179 = vmatpush3.bf16.msra.mxu1 %v2448_v30  ;;  %2182 = vmatprep.mubr.msk.bf16.mxu1 %vm2480_vm6, %v2478_v31 }
 0x3b0   :  { %2180 = vmatprep.subr.bf16.mxu1 %v2478_v31 }
 0x3b3   :  { %2181 = vmatpush3.bf16.msra.mxu1 %v1737_v36 }
 0x3b4   :  { %2186 = vmatprep.subr.bf16.mxu1 %v2478_v31 }
 0x481   :  { %v2166_v37 = vpop.f32.mrb[24].mxu1 }
 0x482   :  { %v2167_v40 = vpop.f32.mrb[25].mxu1 }
 0x483   :  { %v2168_v41 = vadd.f32 %v2167_v40, %v2166_v37  ;;  %v2169_v43 = vpop.f32.mrb[26].mxu1 }
 0x484   :  { %v2170_v44 = vpop.f32.mrb[27].mxu1 }
 0x485   :  { %v1700_v45 = vadd.f32 %v2168_v41, %v2037_v38 }
 0x487   :  { %v1705_v46 = vmax.f32 %v1700_v45, 0.0 }
 0x489   :  { %v1706_v48 = vpack.c.bf16 %v1705_v46, %v1705_v46 }
 0x48b   :  { %2183 = vmatmul.mubr.msk.bf16.vlgmr.msra.gmra.mrb[28].mxu1 %vm1729_vm7, %v1706_v48 }
 0x48c   :  { %2187 = vmatpush3.bf16.msra.mxu1 %v2450_v47  ;;  %2190 = vmatprep.mubr.msk.bf16.mxu1 %vm2480_vm6, %v2478_v31 }
 0x48d   :  { %2188 = vmatprep.subr.bf16.mxu1 %v2478_v31 }
 0x490   :  { %2189 = vmatpush3.bf16.msra.mxu1 %v2451_v49 }
 0x55e   :  { %v1773_v51 = vpop.f32.mrb[28].mxu1 }
 0x55f   :  { %v1774_v52 = vadd.f32 %v2056_v50, %v1773_v51  ;;  %v2184_v53 = vpop.f32.mrb[29].mxu1 }
 0x560   :  { %v1776_v54 = vpop.f32.mrb[30].mxu1 }
 0x561   :  { %v1779_v55 = vmax.f32 %v1774_v52, 0.0  ;;  %v2185_v58 = vpop.f32.mrb[31].mxu1 }
 0x563   :  { %v1780_v59 = vpack.c.bf16 %v1779_v55, %v1779_v55 }
 0x565   :  { %2191 = vmatmul.mubr.msk.bf16.vlgmr.msra.gmra.mrb[32].mxu1 %vm1804_vm8, %v1780_v59 }
 0x638   :  { %v1842_v2 = vpop.f32.mrb[32].mxu1 }
 0x639   :  { %v1843_v39 = vadd.f32 %v2060_v26, %v1842_v2  ;;  %v2192_v42 = vpop.f32.mrb[33].mxu1 }
 0x63a   :  { %v1845_v60 = vpop.f32.mrb[34].mxu1 }
 0x63b   :  { %1848 = vst [vmem:[#allocation3] sm:$0xff] %v1843_v39  ;;  %v2193_v61 = vpop.f32.mrb[35].mxu1 }
 0x63c   :  { %2464 = shalt.err (!%p2461_p4)
}
 0x63d   :  { %s2465_s12 = scalar_lea.hbm %s3154_s13, 128 }
 0x63e   :  { %p2466_p5 = scmp.ne.s32.totalorder %s3154_s13, %s2465_s12  ;;  %p2469_p6 = scmp.lt.u32.totalorder %s2465_s12, %s3154_s13 }
 0x640   :  { %p2471_p7 = pnand %p2469_p6, %p2466_p5 }
 0x642   :  { %2474 = shalt.err (!%p2471_p7)
}
 0x643   :  { %1858 = dma.vmem_to_hbm [thread:$0]  %s1856_s11, 128, %s3154_s13, [#allocation4]  }
 0x644   :  { %2475 = dma.done.wait [#allocation4], 128  }
 0x645   :  { %2476 = vsyncadd [#allocation4], 4294967168 }
 0x646   :  { %1862 = vsyncpa [#allocation4], 1 }

</bundles_post_ra>
